<compile_context>
chip_gen: v7x
topology: tpu7x:2x2x1
jax: 0.10.0
libtpu: 0.0.40
codegen_flags: <defaults>
</compile_context>

<pallas_src>
import jax
import jax.numpy as jnp
from jax import lax
from jax.experimental import pallas as pl
from jax.experimental.pallas import tpu as pltpu

_VMEM_LIMIT = 32 * 1024 * 1024  # safe on v5e/v6e (128 MiB phys) and v7x (64 MiB)


def _round_up(x, m):
    return (x + m - 1) // m * m


def _pick_tile(total, tile_default):
    # Cap the tile so the 1-D grid has >= 2 steps whenever possible (v7x has
    # two TensorCores per chip; a 1-step grid leaves one idle).
    return max(1, min(tile_default, (total + 1) // 2))


# ----------------------------------------------------------------------------
# Pallas kernels
# ----------------------------------------------------------------------------
def _conv_relu_pool_kernel(xe_ref, xo_ref, w_ref, b_ref, o_ref):
    """Fused 3x3-conv (as matmul) + 2x2 maxpool + bias + ReLU.

    xe_ref/xo_ref: (TR, 2, Wop, K) bf16 -- im2col patches for the even / odd
        pool-x phase; dims = (pooled row, pool-y phase, pooled col, K).
    w_ref: (K, Cout) bf16     b_ref: (1, 1, Cout) f32
    o_ref: (TR, Wop, Cout) bf16 -- pooled, ReLU'd output rows.

    max-pool before bias+ReLU is exact: max_q relu(s_q+b) == relu(max_q s_q + b).
    """
    TR, _, Wop, K = xe_ref.shape
    Cout = w_ref.shape[1]
    w = w_ref[...]
    # Leading-dim merges/splits keep the (Wop, *) minor pair intact (Wop is a
    # multiple of 8), so these reshapes are layout no-ops.
    ye = jnp.dot(xe_ref[...].reshape(TR * 2 * Wop, K), w,
                 preferred_element_type=jnp.float32)
    yo = jnp.dot(xo_ref[...].reshape(TR * 2 * Wop, K), w,
                 preferred_element_type=jnp.float32)
    m = jnp.maximum(ye, yo).reshape(TR, 2, Wop, Cout)    # pool over x
    m = jnp.maximum(m[:, 0], m[:, 1])                    # pool over y
    o_ref[...] = jnp.maximum(m + b_ref[...], 0.0).astype(o_ref.dtype)


def _fc_head_kernel(x_ref, w1_ref, b1_ref, w2_ref, b2_ref, o_ref):
    """Fused fc1 + ReLU + fc2 + bias; the (TM,128) hidden never leaves VMEM."""
    h = jnp.dot(x_ref[...], w1_ref[...], preferred_element_type=jnp.float32)
    h = jnp.maximum(h + b1_ref[...], 0.0).astype(jnp.bfloat16)
    o = jnp.dot(h, w2_ref[...], preferred_element_type=jnp.float32)
    o_ref[...] = (o + b2_ref[...]).astype(o_ref.dtype)


# ----------------------------------------------------------------------------
# Wrappers (tiling / pipelining + minimal XLA data-movement glue)
# ----------------------------------------------------------------------------
def conv3x3_relu_pool(x, w_mat, b, *, tile_rows=128):
    """x: (N, H, W, Cin) bf16 NHWC.  w_mat: (Kpad, Cout) bf16, rows ordered
    (ky, kx, cin) and zero-padded to Kpad.  b: (1, 1, Cout) f32.
    Returns pooled, ReLU'd (N, H//2, W//2, Cout) bf16."""
    N, H, W, Cin = x.shape
    Kpad, Cout = w_mat.shape
    Ho, Wo = H // 2, W // 2
    Wop = _round_up(Wo, 8)  # pad pooled width so in-kernel reshapes are free

    # --- XLA glue: one fused strided-slice+concat+pad producer per pool-x
    # phase, built straight from the padded activation (no transposes) --------
    xp = jnp.pad(x, ((0, 0), (1, 1), (1, 1), (0, 0)))
    phases = []
    for dx in (0, 1):
        cols = [xp[:, ky:ky + H, dx + kx:dx + kx + 2 * Wo - 1:2, :]
                for ky in range(3) for kx in range(3)]
        pat = jnp.concatenate(cols, axis=-1)                 # (N, H, Wo, 9*Cin)
        pat = jnp.pad(pat, ((0, 0), (0, 0), (0, Wop - Wo),
                            (0, Kpad - 9 * Cin)))
        # (N*Ho, 2, Wop, Kpad); rows = (n, ho), dim1 = pool-y phase
        phases.append(pat.reshape(N * Ho, 2, Wop, Kpad))

    R = N * Ho
    TR = _pick_tile(R, tile_rows)
    Rp = _round_up(R, TR)
    if Rp > R:
        phases = [jnp.pad(p, ((0, Rp - R), (0, 0), (0, 0), (0, 0)))
                  for p in phases]

    cost = pl.CostEstimate(
        flops=2 * (2 * Rp * 2 * Wop) * Kpad * Cout,
        transcendentals=0,
        bytes_accessed=(2 * Rp * 2 * Wop * Kpad + Kpad * Cout
                        + Rp * Wop * Cout) * 2,
    )
    out = pl.pallas_call(
        _conv_relu_pool_kernel,
        out_shape=jax.ShapeDtypeStruct((Rp, Wop, Cout), jnp.bfloat16),
        grid=(Rp // TR,),
        in_specs=[
            pl.BlockSpec((TR, 2, Wop, Kpad), lambda i: (i, 0, 0, 0)),
            pl.BlockSpec((TR, 2, Wop, Kpad), lambda i: (i, 0, 0, 0)),
            pl.BlockSpec((Kpad, Cout), lambda i: (0, 0)),
            pl.BlockSpec((1, 1, Cout), lambda i: (0, 0, 0)),
        ],
        out_specs=pl.BlockSpec((TR, Wop, Cout), lambda i: (i, 0, 0)),
        compiler_params=pltpu.CompilerParams(
            dimension_semantics=("parallel",),
            vmem_limit_bytes=_VMEM_LIMIT),
        cost_estimate=cost,
    )(phases[0], phases[1], w_mat, b)
    # drop padded rows / padded pooled columns, back to NHWC
    return out[:R, :Wo, :].reshape(N, Ho, Wo, Cout)


def fc_head(x, w1, b1, w2, b2, *, tile_m=1024):
    """x: (N, K) bf16.  w1: (K,128) bf16, b1: (1,128) f32, w2: (128,128) bf16
    (fc2 padded to 128 lanes), b2: (1,128) f32.  Returns (N, 10) f32 logits."""
    N, K = x.shape
    tm = max(8, min(tile_m, _round_up((N + 1) // 2, 8)))
    Np = _round_up(N, tm)
    if Np > N:
        x = jnp.pad(x, ((0, Np - N), (0, 0)))
    cost = pl.CostEstimate(
        flops=2 * Np * K * 128 + 2 * Np * 128 * 128,
        transcendentals=0,
        bytes_accessed=Np * K * 2 + K * 128 * 2 + 128 * 128 * 2 + Np * 128 * 4,
    )
    out = pl.pallas_call(
        _fc_head_kernel,
        out_shape=jax.ShapeDtypeStruct((Np, 128), jnp.float32),
        grid=(Np // tm,),
        in_specs=[
            pl.BlockSpec((tm, K), lambda i: (i, 0)),
            pl.BlockSpec((K, 128), lambda i: (0, 0)),
            pl.BlockSpec((1, 128), lambda i: (0, 0)),
            pl.BlockSpec((128, 128), lambda i: (0, 0)),
            pl.BlockSpec((1, 128), lambda i: (0, 0)),
        ],
        out_specs=pl.BlockSpec((tm, 128), lambda i: (i, 0)),
        compiler_params=pltpu.CompilerParams(
            dimension_semantics=("parallel",),
            vmem_limit_bytes=_VMEM_LIMIT),
        cost_estimate=cost,
    )(x, w1, b1, w2, b2)
    return out[:N, :10]


# ----------------------------------------------------------------------------
# Parameters
# ----------------------------------------------------------------------------
def init_params(key):
    ks = jax.random.split(key, 8)
    s = 0.05
    return {
        "conv1_w": s * jax.random.normal(ks[0], (32, 1, 3, 3), jnp.float32),
        "conv1_b": s * jax.random.normal(ks[1], (32,), jnp.float32),
        "conv2_w": s * jax.random.normal(ks[2], (64, 32, 3, 3), jnp.float32),
        "conv2_b": s * jax.random.normal(ks[3], (64,), jnp.float32),
        "fc1_w":   s * jax.random.normal(ks[4], (128, 64 * 7 * 7), jnp.float32),
        "fc1_b":   s * jax.random.normal(ks[5], (128,), jnp.float32),
        "fc2_w":   s * jax.random.normal(ks[6], (10, 128), jnp.float32),
        "fc2_b":   s * jax.random.normal(ks[7], (10,), jnp.float32),
    }


def prepare_params(params):
    """One-time weight re-layout (called OUTSIDE jit): conv weights ->
    (Kpad, Cout) im2col matrices with rows ordered (ky, kx, cin); fc1 columns
    permuted so our NHWC flatten matches torch's NCHW .view(-1, 64*7*7);
    fc2 padded to 128 output lanes.  Matmul operands bf16; biases f32."""
    def conv_mat(w):
        cout, cin = w.shape[0], w.shape[1]
        m = jnp.transpose(w, (2, 3, 1, 0)).reshape(9 * cin, cout)  # (ky,kx,cin)
        kpad = _round_up(9 * cin, 16)
        if kpad > 9 * cin:
            m = jnp.pad(m, ((0, kpad - 9 * cin), (0, 0)))
        return m.astype(jnp.bfloat16)

    # torch fc1 column index = c*49 + h*7 + w ; our activation is NHWC-flat
    # (h*7*64 + w*64 + c) -> permute the columns once here.
    w1 = params["fc1_w"].reshape(128, 64, 7, 7).transpose(2, 3, 1, 0)
    w1 = w1.reshape(64 * 7 * 7, 128)
    w2 = jnp.pad(params["fc2_w"].T, ((0, 0), (0, 128 - 10)))      # (128, 128)
    b2 = jnp.pad(params["fc2_b"], (0, 128 - 10))

    return {
        "conv1_w": conv_mat(params["conv1_w"]),
        "conv1_b": params["conv1_b"].reshape(1, 1, -1).astype(jnp.float32),
        "conv2_w": conv_mat(params["conv2_w"]),
        "conv2_b": params["conv2_b"].reshape(1, 1, -1).astype(jnp.float32),
        "fc1_w": w1.astype(jnp.bfloat16),
        "fc1_b": params["fc1_b"].reshape(1, -1).astype(jnp.float32),
        "fc2_w": w2.astype(jnp.bfloat16),
        "fc2_b": b2.reshape(1, -1).astype(jnp.float32),
    }


# ----------------------------------------------------------------------------
# Model forward
# ----------------------------------------------------------------------------
@jax.jit
def mnist_net_forward(x_nchw, p):
    """x_nchw: (N, 1, 28, 28) float32 (same as torch).  Returns (N, 10) f32."""
    x = jnp.transpose(x_nchw, (0, 2, 3, 1)).astype(jnp.bfloat16)          # NHWC
    x = conv3x3_relu_pool(x, p["conv1_w"], p["conv1_b"], tile_rows=256)   # (N,14,14,32)
    x = conv3x3_relu_pool(x, p["conv2_w"], p["conv2_b"], tile_rows=128)   # (N, 7, 7,64)
    x = x.reshape(x.shape[0], 7 * 7 * 64)        # NHWC flatten (folded in fc1_w)
    return fc_head(x, p["fc1_w"], p["fc1_b"], p["fc2_w"], p["fc2_b"])     # (N,10)


# ----------------------------------------------------------------------------
# Pure-JAX f32 reference (validation only)
# ----------------------------------------------------------------------------
def _reference_forward(x_nchw, params):
    dn = ("NCHW", "OIHW", "NCHW")
    y = lax.conv_general_dilated(x_nchw, params["conv1_w"], (1, 1), "SAME",
                                 dimension_numbers=dn)
    y = jax.nn.relu(y + params["conv1_b"][None, :, None, None])
    y = lax.reduce_window(y, -jnp.inf, lax.max, (1, 1, 2, 2), (1, 1, 2, 2), "VALID")
    y = lax.conv_general_dilated(y, params["conv2_w"], (1, 1), "SAME",
                                 dimension_numbers=dn)
    y = jax.nn.relu(y + params["conv2_b"][None, :, None, None])
    y = lax.reduce_window(y, -jnp.inf, lax.max, (1, 1, 2, 2), (1, 1, 2, 2), "VALID")
    y = y.reshape(y.shape[0], -1)                   # NCHW-order flatten (torch)
    y = jax.nn.relu(y @ params["fc1_w"].T + params["fc1_b"])
    return y @ params["fc2_w"].T + params["fc2_b"]


if __name__ == "__main__":
    key = jax.random.PRNGKey(0)
    kx, kp = jax.random.split(key)
    # MNIST-shaped input: fc1 (64*7*7) forces 28x28 spatial; batch=2.
    x = jax.random.normal(kx, (2, 1, 28, 28), jnp.float32)
    params = init_params(kp)
    prepped = prepare_params(params)          # one-time weight prep, outside jit

    out = jax.block_until_ready(mnist_net_forward(x, prepped))
    assert out.shape == (2, 10) and out.dtype == jnp.float32
    assert bool(jnp.all(jnp.isfinite(out)))

    ref = _reference_forward(x, params)       # f32 reference; bf16 kernels => loose tol
    err = float(jnp.max(jnp.abs(out - ref)))
    assert err < 5e-2, f"mismatch vs f32 reference: max abs err {err}"
    print("KERNEL_OK")
</pallas_src>

<mosaic_0001>
module attributes {stable_mosaic.version = 11 : i64} {
  func.func @_conv_relu_pool_kernel(%arg0: i32, %arg1: memref<14x2x16x16xbf16, #tpu.memory_space<vmem>>, %arg2: memref<14x2x16x16xbf16, #tpu.memory_space<vmem>>, %arg3: memref<16x32xbf16, #tpu.memory_space<vmem>>, %arg4: memref<1x1x32xf32, #tpu.memory_space<vmem>>, %arg5: memref<14x16x32xbf16, #tpu.memory_space<vmem>>) attributes {dimension_semantics = [#tpu.dimension_semantics<parallel>], iteration_bounds = array<i64: 2>, scalar_prefetch = 0 : i64, scratch_operands = 0 : i64, tpu.core_type = #tpu.core_type<tc>, window_params = [{transform_indices = @transform_0, window_bounds = array<i64: 14, 2, 16, 16>}, {transform_indices = @transform_1, window_bounds = array<i64: 14, 2, 16, 16>}, {pipeline_mode = #tpu.pipeline_mode<synchronous>, transform_indices = @transform_2, window_bounds = array<i64: 16, 32>}, {pipeline_mode = #tpu.pipeline_mode<synchronous>, transform_indices = @transform_3, window_bounds = array<i64: 1, 1, 32>}, {transform_indices = @transform_4, window_bounds = array<i64: 14, 16, 32>}]} {
    %c0 = arith.constant 0 : index
    %c0_0 = arith.constant 0 : index
    %0 = vector.load %arg3[%c0, %c0_0] : memref<16x32xbf16, #tpu.memory_space<vmem>>, vector<16x32xbf16>
    %c0_1 = arith.constant 0 : index
    %c0_2 = arith.constant 0 : index
    %c0_3 = arith.constant 0 : index
    %c0_4 = arith.constant 0 : index
    %1 = vector.load %arg1[%c0_1, %c0_2, %c0_3, %c0_4] : memref<14x2x16x16xbf16, #tpu.memory_space<vmem>>, vector<14x2x16x16xbf16>
    %2 = vector.shape_cast %1 : vector<14x2x16x16xbf16> to vector<448x16xbf16>
    %cst = arith.constant dense<0.000000e+00> : vector<448x32xf32>
    %3 = tpu.matmul %2, %0, %cst {dimension_numbers = #tpu.dot_dimension_numbers<[1], [0], [0], [1], [0, 0, 1, 1], [], []>} : vector<448x16xbf16>, vector<16x32xbf16>, vector<448x32xf32> -> vector<448x32xf32>
    %c0_5 = arith.constant 0 : index
    %c0_6 = arith.constant 0 : index
    %c0_7 = arith.constant 0 : index
    %c0_8 = arith.constant 0 : index
    %4 = vector.load %arg2[%c0_5, %c0_6, %c0_7, %c0_8] : memref<14x2x16x16xbf16, #tpu.memory_space<vmem>>, vector<14x2x16x16xbf16>
    %5 = vector.shape_cast %4 : vector<14x2x16x16xbf16> to vector<448x16xbf16>
    %cst_9 = arith.constant dense<0.000000e+00> : vector<448x32xf32>
    %6 = tpu.matmul %5, %0, %cst_9 {dimension_numbers = #tpu.dot_dimension_numbers<[1], [0], [0], [1], [0, 0, 1, 1], [], []>} : vector<448x16xbf16>, vector<16x32xbf16>, vector<448x32xf32> -> vector<448x32xf32>
    %7 = arith.maximumf %3, %6 : vector<448x32xf32>
    %8 = vector.shape_cast %7 : vector<448x32xf32> to vector<14x2x16x32xf32>
    %9 = vector.extract_strided_slice %8 {offsets = [0, 0, 0, 0], sizes = [14, 1, 16, 32], strides = [1, 1, 1, 1]} : vector<14x2x16x32xf32> to vector<14x1x16x32xf32>
    %10 = vector.shape_cast %9 : vector<14x1x16x32xf32> to vector<14x16x32xf32>
    %11 = vector.extract_strided_slice %8 {offsets = [0, 1, 0, 0], sizes = [14, 1, 16, 32], strides = [1, 1, 1, 1]} : vector<14x2x16x32xf32> to vector<14x1x16x32xf32>
    %12 = vector.shape_cast %11 : vector<14x1x16x32xf32> to vector<14x16x32xf32>
    %13 = arith.maximumf %10, %12 : vector<14x16x32xf32>
    %c0_10 = arith.constant 0 : index
    %c0_11 = arith.constant 0 : index
    %c0_12 = arith.constant 0 : index
    %14 = vector.load %arg4[%c0_10, %c0_11, %c0_12] : memref<1x1x32xf32, #tpu.memory_space<vmem>>, vector<1x1x32xf32>
    %15 = vector.broadcast %14 : vector<1x1x32xf32> to vector<14x16x32xf32>
    %16 = arith.addf %13, %15 : vector<14x16x32xf32>
    %cst_13 = arith.constant 0.000000e+00 : f32
    %17 = vector.broadcast %cst_13 : f32 to vector<14x16x32xf32>
    %18 = arith.maximumf %16, %17 : vector<14x16x32xf32>
    %19 = arith.truncf %18 : vector<14x16x32xf32> to vector<14x16x32xbf16>
    %c0_14 = arith.constant 0 : index
    %c0_15 = arith.constant 0 : index
    %c0_16 = arith.constant 0 : index
    %20 = vector.load %arg5[%c0_14, %c0_15, %c0_16] : memref<14x16x32xbf16, #tpu.memory_space<vmem>>, vector<14x16x32xbf16>
    tpu.vector_store %arg5[%c0_14, %c0_15, %c0_16], %19 {strides = array<i32>} : memref<14x16x32xbf16, #tpu.memory_space<vmem>>, vector<14x16x32xbf16>,
    return
  }
  func.func @transform_0(%arg0: i32) -> (i32, i32, i32, i32) {
    %c0_i32 = arith.constant 0 : i32
    %c0_i32_0 = arith.constant 0 : i32
    %c0_i32_1 = arith.constant 0 : i32
    %c0_i32_2 = arith.constant 0 : i32
    return %arg0, %c0_i32, %c0_i32_0, %c0_i32_1 : i32, i32, i32, i32
  }
  func.func @transform_1(%arg0: i32) -> (i32, i32, i32, i32) {
    %c0_i32 = arith.constant 0 : i32
    %c0_i32_0 = arith.constant 0 : i32
    %c0_i32_1 = arith.constant 0 : i32
    %c0_i32_2 = arith.constant 0 : i32
    return %arg0, %c0_i32, %c0_i32_0, %c0_i32_1 : i32, i32, i32, i32
  }
  func.func @transform_2(%arg0: i32) -> (i32, i32) {
    %c0_i32 = arith.constant 0 : i32
    %c0_i32_0 = arith.constant 0 : i32
    %c0_i32_1 = arith.constant 0 : i32
    return %c0_i32, %c0_i32_0 : i32, i32
  }
  func.func @transform_3(%arg0: i32) -> (i32, i32, i32) {
    %c0_i32 = arith.constant 0 : i32
    %c0_i32_0 = arith.constant 0 : i32
    %c0_i32_1 = arith.constant 0 : i32
    %c0_i32_2 = arith.constant 0 : i32
    return %c0_i32, %c0_i32_0, %c0_i32_1 : i32, i32, i32
  }
  func.func @transform_4(%arg0: i32) -> (i32, i32, i32) {
    %c0_i32 = arith.constant 0 : i32
    %c0_i32_0 = arith.constant 0 : i32
    %c0_i32_1 = arith.constant 0 : i32
    return %arg0, %c0_i32, %c0_i32_0 : i32, i32, i32
  }
}

module attributes {stable_mosaic.version = 11 : i64} {
  func.func @_conv_relu_pool_kernel(%arg0: i32, %arg1: memref<7x2x8x288xbf16, #tpu.memory_space<vmem>>, %arg2: memref<7x2x8x288xbf16, #tpu.memory_space<vmem>>, %arg3: memref<288x64xbf16, #tpu.memory_space<vmem>>, %arg4: memref<1x1x64xf32, #tpu.memory_space<vmem>>, %arg5: memref<7x8x64xbf16, #tpu.memory_space<vmem>>) attributes {dimension_semantics = [#tpu.dimension_semantics<parallel>], iteration_bounds = array<i64: 2>, scalar_prefetch = 0 : i64, scratch_operands = 0 : i64, tpu.core_type = #tpu.core_type<tc>, window_params = [{transform_indices = @transform_0, window_bounds = array<i64: 7, 2, 8, 288>}, {transform_indices = @transform_1, window_bounds = array<i64: 7, 2, 8, 288>}, {pipeline_mode = #tpu.pipeline_mode<synchronous>, transform_indices = @transform_2, window_bounds = array<i64: 288, 64>}, {pipeline_mode = #tpu.pipeline_mode<synchronous>, transform_indices = @transform_3, window_bounds = array<i64: 1, 1, 64>}, {transform_indices = @transform_4, window_bounds = array<i64: 7, 8, 64>}]} {
    %c0 = arith.constant 0 : index
    %c0_0 = arith.constant 0 : index
    %0 = vector.load %arg3[%c0, %c0_0] : memref<288x64xbf16, #tpu.memory_space<vmem>>, vector<288x64xbf16>
    %c0_1 = arith.constant 0 : index
    %c0_2 = arith.constant 0 : index
    %c0_3 = arith.constant 0 : index
    %c0_4 = arith.constant 0 : index
    %1 = vector.load %arg1[%c0_1, %c0_2, %c0_3, %c0_4] : memref<7x2x8x288xbf16, #tpu.memory_space<vmem>>, vector<7x2x8x288xbf16>
    %2 = vector.shape_cast %1 : vector<7x2x8x288xbf16> to vector<112x288xbf16>
    %cst = arith.constant dense<0.000000e+00> : vector<112x64xf32>
    %3 = tpu.matmul %2, %0, %cst {dimension_numbers = #tpu.dot_dimension_numbers<[1], [0], [0], [1], [0, 0, 1, 1], [], []>} : vector<112x288xbf16>, vector<288x64xbf16>, vector<112x64xf32> -> vector<112x64xf32>
    %c0_5 = arith.constant 0 : index
    %c0_6 = arith.constant 0 : index
    %c0_7 = arith.constant 0 : index
    %c0_8 = arith.constant 0 : index
    %4 = vector.load %arg2[%c0_5, %c0_6, %c0_7, %c0_8] : memref<7x2x8x288xbf16, #tpu.memory_space<vmem>>, vector<7x2x8x288xbf16>
    %5 = vector.shape_cast %4 : vector<7x2x8x288xbf16> to vector<112x288xbf16>
    %cst_9 = arith.constant dense<0.000000e+00> : vector<112x64xf32>
    %6 = tpu.matmul %5, %0, %cst_9 {dimension_numbers = #tpu.dot_dimension_numbers<[1], [0], [0], [1], [0, 0, 1, 1], [], []>} : vector<112x288xbf16>, vector<288x64xbf16>, vector<112x64xf32> -> vector<112x64xf32>
    %7 = arith.maximumf %3, %6 : vector<112x64xf32>
    %8 = vector.shape_cast %7 : vector<112x64xf32> to vector<7x2x8x64xf32>
    %9 = vector.extract_strided_slice %8 {offsets = [0, 0, 0, 0], sizes = [7, 1, 8, 64], strides = [1, 1, 1, 1]} : vector<7x2x8x64xf32> to vector<7x1x8x64xf32>
    %10 = vector.shape_cast %9 : vector<7x1x8x64xf32> to vector<7x8x64xf32>
    %11 = vector.extract_strided_slice %8 {offsets = [0, 1, 0, 0], sizes = [7, 1, 8, 64], strides = [1, 1, 1, 1]} : vector<7x2x8x64xf32> to vector<7x1x8x64xf32>
    %12 = vector.shape_cast %11 : vector<7x1x8x64xf32> to vector<7x8x64xf32>
    %13 = arith.maximumf %10, %12 : vector<7x8x64xf32>
    %c0_10 = arith.constant 0 : index
    %c0_11 = arith.constant 0 : index
    %c0_12 = arith.constant 0 : index
    %14 = vector.load %arg4[%c0_10, %c0_11, %c0_12] : memref<1x1x64xf32, #tpu.memory_space<vmem>>, vector<1x1x64xf32>
    %15 = vector.broadcast %14 : vector<1x1x64xf32> to vector<7x8x64xf32>
    %16 = arith.addf %13, %15 : vector<7x8x64xf32>
    %cst_13 = arith.constant 0.000000e+00 : f32
    %17 = vector.broadcast %cst_13 : f32 to vector<7x8x64xf32>
    %18 = arith.maximumf %16, %17 : vector<7x8x64xf32>
    %19 = arith.truncf %18 : vector<7x8x64xf32> to vector<7x8x64xbf16>
    %c0_14 = arith.constant 0 : index
    %c0_15 = arith.constant 0 : index
    %c0_16 = arith.constant 0 : index
    %20 = vector.load %arg5[%c0_14, %c0_15, %c0_16] : memref<7x8x64xbf16, #tpu.memory_space<vmem>>, vector<7x8x64xbf16>
    tpu.vector_store %arg5[%c0_14, %c0_15, %c0_16], %19 {strides = array<i32>} : memref<7x8x64xbf16, #tpu.memory_space<vmem>>, vector<7x8x64xbf16>,
    return
  }
  func.func @transform_0(%arg0: i32) -> (i32, i32, i32, i32) {
    %c0_i32 = arith.constant 0 : i32
    %c0_i32_0 = arith.constant 0 : i32
    %c0_i32_1 = arith.constant 0 : i32
    %c0_i32_2 = arith.constant 0 : i32
    return %arg0, %c0_i32, %c0_i32_0, %c0_i32_1 : i32, i32, i32, i32
  }
  func.func @transform_1(%arg0: i32) -> (i32, i32, i32, i32) {
    %c0_i32 = arith.constant 0 : i32
    %c0_i32_0 = arith.constant 0 : i32
    %c0_i32_1 = arith.constant 0 : i32
    %c0_i32_2 = arith.constant 0 : i32
    return %arg0, %c0_i32, %c0_i32_0, %c0_i32_1 : i32, i32, i32, i32
  }
  func.func @transform_2(%arg0: i32) -> (i32, i32) {
    %c0_i32 = arith.constant 0 : i32
    %c0_i32_0 = arith.constant 0 : i32
    %c0_i32_1 = arith.constant 0 : i32
    return %c0_i32, %c0_i32_0 : i32, i32
  }
  func.func @transform_3(%arg0: i32) -> (i32, i32, i32) {
    %c0_i32 = arith.constant 0 : i32
    %c0_i32_0 = arith.constant 0 : i32
    %c0_i32_1 = arith.constant 0 : i32
    %c0_i32_2 = arith.constant 0 : i32
    return %c0_i32, %c0_i32_0, %c0_i32_1 : i32, i32, i32
  }
  func.func @transform_4(%arg0: i32) -> (i32, i32, i32) {
    %c0_i32 = arith.constant 0 : i32
    %c0_i32_0 = arith.constant 0 : i32
    %c0_i32_1 = arith.constant 0 : i32
    return %arg0, %c0_i32, %c0_i32_0 : i32, i32, i32
  }
}

module attributes {stable_mosaic.version = 11 : i64} {
  func.func @_fc_head_kernel(%arg0: i32, %arg1: memref<8x3136xbf16, #tpu.memory_space<vmem>>, %arg2: memref<3136x128xbf16, #tpu.memory_space<vmem>>, %arg3: memref<1x128xf32, #tpu.memory_space<vmem>>, %arg4: memref<128x128xbf16, #tpu.memory_space<vmem>>, %arg5: memref<1x128xf32, #tpu.memory_space<vmem>>, %arg6: memref<8x128xf32, #tpu.memory_space<vmem>>) attributes {dimension_semantics = [#tpu.dimension_semantics<parallel>], iteration_bounds = array<i64: 1>, scalar_prefetch = 0 : i64, scratch_operands = 0 : i64, tpu.core_type = #tpu.core_type<tc>, window_params = [{transform_indices = @transform_0, window_bounds = array<i64: 8, 3136>}, {pipeline_mode = #tpu.pipeline_mode<synchronous>, transform_indices = @transform_1, window_bounds = array<i64: 3136, 128>}, {pipeline_mode = #tpu.pipeline_mode<synchronous>, transform_indices = @transform_2, window_bounds = array<i64: 1, 128>}, {pipeline_mode = #tpu.pipeline_mode<synchronous>, transform_indices = @transform_3, window_bounds = array<i64: 128, 128>}, {pipeline_mode = #tpu.pipeline_mode<synchronous>, transform_indices = @transform_4, window_bounds = array<i64: 1, 128>}, {transform_indices = @transform_5, window_bounds = array<i64: 8, 128>}]} {
    %c0 = arith.constant 0 : index
    %c0_0 = arith.constant 0 : index
    %0 = vector.load %arg1[%c0, %c0_0] : memref<8x3136xbf16, #tpu.memory_space<vmem>>, vector<8x3136xbf16>
    %c0_1 = arith.constant 0 : index
    %c0_2 = arith.constant 0 : index
    %1 = vector.load %arg2[%c0_1, %c0_2] : memref<3136x128xbf16, #tpu.memory_space<vmem>>, vector<3136x128xbf16>
    %cst = arith.constant dense<0.000000e+00> : vector<8x128xf32>
    %2 = tpu.matmul %0, %1, %cst {dimension_numbers = #tpu.dot_dimension_numbers<[1], [0], [0], [1], [0, 0, 1, 1], [], []>} : vector<8x3136xbf16>, vector<3136x128xbf16>, vector<8x128xf32> -> vector<8x128xf32>
    %c0_3 = arith.constant 0 : index
    %c0_4 = arith.constant 0 : index
    %3 = vector.load %arg3[%c0_3, %c0_4] : memref<1x128xf32, #tpu.memory_space<vmem>>, vector<1x128xf32>
    %4 = vector.broadcast %3 : vector<1x128xf32> to vector<8x128xf32>
    %5 = arith.addf %2, %4 : vector<8x128xf32>
    %cst_5 = arith.constant 0.000000e+00 : f32
    %6 = vector.broadcast %cst_5 : f32 to vector<8x128xf32>
    %7 = arith.maximumf %5, %6 : vector<8x128xf32>
    %8 = arith.truncf %7 : vector<8x128xf32> to vector<8x128xbf16>
    %c0_6 = arith.constant 0 : index
    %c0_7 = arith.constant 0 : index
    %9 = vector.load %arg4[%c0_6, %c0_7] : memref<128x128xbf16, #tpu.memory_space<vmem>>, vector<128x128xbf16>
    %cst_8 = arith.constant dense<0.000000e+00> : vector<8x128xf32>
    %10 = tpu.matmul %8, %9, %cst_8 {dimension_numbers = #tpu.dot_dimension_numbers<[1], [0], [0], [1], [0, 0, 1, 1], [], []>} : vector<8x128xbf16>, vector<128x128xbf16>, vector<8x128xf32> -> vector<8x128xf32>
    %c0_9 = arith.constant 0 : index
    %c0_10 = arith.constant 0 : index
    %11 = vector.load %arg5[%c0_9, %c0_10] : memref<1x128xf32, #tpu.memory_space<vmem>>, vector<1x128xf32>
    %12 = vector.broadcast %11 : vector<1x128xf32> to vector<8x128xf32>
    %13 = arith.addf %10, %12 : vector<8x128xf32>
    %c0_11 = arith.constant 0 : index
    %c0_12 = arith.constant 0 : index
    %14 = vector.load %arg6[%c0_11, %c0_12] : memref<8x128xf32, #tpu.memory_space<vmem>>, vector<8x128xf32>
    tpu.vector_store %arg6[%c0_11, %c0_12], %13 {strides = array<i32>} : memref<8x128xf32, #tpu.memory_space<vmem>>, vector<8x128xf32>,
    return
  }
  func.func @transform_0(%arg0: i32) -> (i32, i32) {
    %c0_i32 = arith.constant 0 : i32
    %c0_i32_0 = arith.constant 0 : i32
    return %arg0, %c0_i32 : i32, i32
  }
  func.func @transform_1(%arg0: i32) -> (i32, i32) {
    %c0_i32 = arith.constant 0 : i32
    %c0_i32_0 = arith.constant 0 : i32
    %c0_i32_1 = arith.constant 0 : i32
    return %c0_i32, %c0_i32_0 : i32, i32
  }
  func.func @transform_2(%arg0: i32) -> (i32, i32) {
    %c0_i32 = arith.constant 0 : i32
    %c0_i32_0 = arith.constant 0 : i32
    %c0_i32_1 = arith.constant 0 : i32
    return %c0_i32, %c0_i32_0 : i32, i32
  }
  func.func @transform_3(%arg0: i32) -> (i32, i32) {
    %c0_i32 = arith.constant 0 : i32
    %c0_i32_0 = arith.constant 0 : i32
    %c0_i32_1 = arith.constant 0 : i32
    return %c0_i32, %c0_i32_0 : i32, i32
  }
  func.func @transform_4(%arg0: i32) -> (i32, i32) {
    %c0_i32 = arith.constant 0 : i32
    %c0_i32_0 = arith.constant 0 : i32
    %c0_i32_1 = arith.constant 0 : i32
    return %c0_i32, %c0_i32_0 : i32, i32
  }
  func.func @transform_5(%arg0: i32) -> (i32, i32) {
    %c0_i32 = arith.constant 0 : i32
    %c0_i32_0 = arith.constant 0 : i32
    return %arg0, %c0_i32 : i32, i32
  }
}

</mosaic_0001>

<bundles_post_ra>
// kernel: mnist_net_forward.3
= control target key start
LH: loop header
LB: loop body
LE: loop exit
PB: predicated region body
PF: predicated region fallthrough
CT: control target
= control target key end

     0   :  { %s2131_s15 = smov 0   ;;  %s2365_s0 = inlined_call_operand.vmem [shape: bf16[28,2,16,16], index: 0, kind: input, shape index: {}]   ;;  %s2366_s1 = inlined_call_operand.vmem [shape: bf16[28,2,16,16], index: 1, kind: input, shape index: {}]   ;;  %s2367_s2 = inlined_call_operand.vmem [shape: bf16[16,32], index: 2, kind: input, shape index: {}]   ;;  %s2368_s3 = inlined_call_operand.vmem [shape: f32[1,1,32], index: 3, kind: input, shape index: {}]   ;;  %s2369_s4 = inlined_call_operand.vmem [shape: bf16[28,16,32], index: 4, kind: output, shape index: {}]  }
   0x1 LB: > { %s1673_s16 = sadd.s32 4294967295, %s2104_s15   ;;  %p1677_p0 = scmp.ge.s32.totalorder %s2104_s15, 1  ;;  %s2104_s15 = sphi %s2131_s15, %s14_s15  }
   0x2   : > { %p176_p1 = scmp.lt.s32.totalorder %s2104_s15, 3 }
   0x4   : > { %p177_p2 = pnand %p1677_p0, %p176_p1 }
   0x5   : > { %v2041_v0 = vld [vmem:[%s2367_s2] sm:$0xff] (!%p177_p2)   ;;  %s210_s19 = smul.u32 (!%p177_p2), 14, %s1673_s16  ;;  %vm436_vm0 = vcmask (!%p177_p2), 130048   ;;  %vm1574_vm1 = vcmask (!%p177_p2), 257024  }
   0x6   : > { %180 = sbr.rel (%p177_p2) target bundleno = 349 (0x15d), region = 36  ;;  %1917 = vmatprep.subr.bf16.mxu0 (!%p177_p2), %v2041_v0  ;;  %1975 = vmatprep.subr.bf16.mxu1 (!%p177_p2), %v2041_v0 }
   0x7   : > { %p211_p3 = scmp.lt.s32.totalorder (!%p177_p2), %s210_s19, 27  ;;  %1918 = vmatpush3.bf16.msra.mxu0 (!%p177_p2), %v2041_v0  ;;  %1976 = vmatpush3.bf16.msra.mxu1 (!%p177_p2), %v2041_v0 }
   0xd   : > { %s2371_s19 = smov (!%p211_p3, %s210_s19), 27 }
   0xe   : > { %s1828_s20 = sshll.u32 %s2371_s19, 4  ;;  %s1830_s29 = sshll.u32 %s2371_s19, 3 }
   0xf   : > { %s2148_s23 = scalar_lea.vmem %s2365_s0, %s1828_s20  ;;  %s2153_s26 = scalar_lea.vmem %s2366_s1, %s1828_s20 }
  0x10   : > { %v2042_v1 = vld [vmem:[%s2148_s23] sm:$0xff]   ;;  %v2044_v3 = vld [vmem:[%s2148_s23 + $0x8] sm:$0xff]   ;;  %v2046_v5 = vld [vmem:[%s2148_s23 + $0x10] sm:$0xff]   ;;  %s2278_s6 = scalar_lea.vmem %s2369_s4, %s1830_s29 }
  0x11   : > { %v2043_v2 = vld [vmem:[%s2153_s26] sm:$0xff]   ;;  %1919 = vmatprep.mubr.msk.bf16.mxu0 %vm436_vm0, %v2042_v1  ;;  %v2045_v4 = vld [vmem:[%s2153_s26 + $0x8] sm:$0xff]   ;;  %v2047_v6 = vld [vmem:[%s2153_s26 + $0x10] sm:$0xff]  }
  0x12   : > { %1977 = vmatprep.mubr.msk.bf16.mxu1 %vm436_vm0, %v2043_v2  ;;  %1920 = vmatmul.mubr.msk.bf16.vlgmr.msra.gmra.mrb[0].mxu0 %vm436_vm0, %v2044_v3  ;;  %v2048_v7 = vld [vmem:[%s2148_s23 + $0x18] sm:$0xff]   ;;  %v2050_v9 = vld [vmem:[%s2148_s23 + $0x20] sm:$0xff]   ;;  %v2052_v11 = vld [vmem:[%s2148_s23 + $0x28] sm:$0xff]  }
  0x13   : > { %1978 = vmatmul.mubr.msk.bf16.vlgmr.msra.gmra.mrb[0].mxu1 %vm436_vm0, %v2045_v4  ;;  %1923 = vmatprep.mubr.msk.bf16.mxu0 %vm436_vm0, %v2046_v5  ;;  %v2049_v8 = vld [vmem:[%s2153_s26 + $0x18] sm:$0xff]   ;;  %v2051_v10 = vld [vmem:[%s2153_s26 + $0x20] sm:$0xff]   ;;  %v2053_v12 = vld [vmem:[%s2153_s26 + $0x28] sm:$0xff]  }
  0x14   : > { %1981 = vmatprep.mubr.msk.bf16.mxu1 %vm436_vm0, %v2047_v6  ;;  %v2054_v13 = vld [vmem:[%s2148_s23 + $0x30] sm:$0xff]   ;;  %v2056_v15 = vld [vmem:[%s2148_s23 + $0x38] sm:$0xff]   ;;  %v2058_v17 = vld [vmem:[%s2148_s23 + $0x40] sm:$0xff]  }
  0x15   : > { %v2055_v14 = vld [vmem:[%s2153_s26 + $0x30] sm:$0xff]   ;;  %v2057_v16 = vld [vmem:[%s2153_s26 + $0x38] sm:$0xff]   ;;  %v2059_v18 = vld [vmem:[%s2153_s26 + $0x40] sm:$0xff]  }
  0x16   : > { %v2060_v19 = vld [vmem:[%s2148_s23 + $0x48] sm:$0xff]   ;;  %v2062_v21 = vld [vmem:[%s2148_s23 + $0x50] sm:$0xff]   ;;  %v2064_v23 = vld [vmem:[%s2148_s23 + $0x58] sm:$0xff]  }
  0x17   : > { %v2061_v20 = vld [vmem:[%s2153_s26 + $0x48] sm:$0xff]   ;;  %v2063_v22 = vld [vmem:[%s2153_s26 + $0x50] sm:$0xff]   ;;  %v2065_v24 = vld [vmem:[%s2153_s26 + $0x58] sm:$0xff]  }
  0x18   : > { %v2066_v25 = vld [vmem:[%s2148_s23 + $0x60] sm:$0xff]   ;;  %v2068_v27 = vld [vmem:[%s2148_s23 + $0x68] sm:$0xff]   ;;  %v2070_v29 = vld [vmem:[%s2148_s23 + $0x70] sm:$0xff]  }
  0x19   : > { %v2067_v26 = vld [vmem:[%s2153_s26 + $0x60] sm:$0xff]   ;;  %v2069_v28 = vld [vmem:[%s2153_s26 + $0x68] sm:$0xff]   ;;  %v2071_v30 = vld [vmem:[%s2153_s26 + $0x70] sm:$0xff]  }
  0x1a   : > { %1924 = vmatmul.mubr.msk.bf16.gmra.mrb[4].mxu0 %vm436_vm0, %v2048_v7  ;;  %v2072_v31 = vld [vmem:[%s2148_s23 + $0x78] sm:$0xff]   ;;  %v2074_v33 = vld [vmem:[%s2148_s23 + $0x80] sm:$0xff]   ;;  %v2076_v35 = vld [vmem:[%s2148_s23 + $0x88] sm:$0xff]  }
  0x1b   : > { %1982 = vmatmul.mubr.msk.bf16.gmra.mrb[4].mxu1 %vm436_vm0, %v2049_v8  ;;  %1927 = vmatprep.mubr.msk.bf16.mxu0 %vm436_vm0, %v2050_v9  ;;  %v2073_v32 = vld [vmem:[%s2153_s26 + $0x78] sm:$0xff]   ;;  %v2075_v34 = vld [vmem:[%s2153_s26 + $0x80] sm:$0xff]   ;;  %v2077_v36 = vld [vmem:[%s2153_s26 + $0x88] sm:$0xff]  }
  0x1c   : > { %1985 = vmatprep.mubr.msk.bf16.mxu1 %vm436_vm0, %v2051_v10  ;;  %v2078_v37 = vld [vmem:[%s2148_s23 + $0x90] sm:$0xff]   ;;  %v2080_v39 = vld [vmem:[%s2148_s23 + $0x98] sm:$0xff]   ;;  %v2082_v41 = vld [vmem:[%s2148_s23 + $0xa0] sm:$0xff]  }
  0x1d   : > { %v2079_v38 = vld [vmem:[%s2153_s26 + $0x90] sm:$0xff]   ;;  %v2081_v40 = vld [vmem:[%s2153_s26 + $0x98] sm:$0xff]   ;;  %v2083_v42 = vld [vmem:[%s2153_s26 + $0xa0] sm:$0xff]  }
  0x1e   : > { %v2084_v43 = vld [vmem:[%s2148_s23 + $0xa8] sm:$0xff]   ;;  %v2086_v45 = vld [vmem:[%s2148_s23 + $0xb0] sm:$0xff]   ;;  %v2088_v47 = vld [vmem:[%s2148_s23 + $0xb8] sm:$0xff]  }
  0x1f   : > { %v2085_v44 = vld [vmem:[%s2153_s26 + $0xa8] sm:$0xff]   ;;  %v2087_v46 = vld [vmem:[%s2153_s26 + $0xb0] sm:$0xff]   ;;  %v2089_v48 = vld [vmem:[%s2153_s26 + $0xb8] sm:$0xff]  }
  0x20   : > { %v2090_v49 = vld [vmem:[%s2148_s23 + $0xc0] sm:$0xff]   ;;  %v2092_v51 = vld [vmem:[%s2148_s23 + $0xc8] sm:$0xff]   ;;  %v2094_v53 = vld [vmem:[%s2148_s23 + $0xd0] sm:$0xff]  }
  0x21   : > { %v2091_v50 = vld [vmem:[%s2153_s26 + $0xc0] sm:$0xff]   ;;  %v2093_v52 = vld [vmem:[%s2153_s26 + $0xc8] sm:$0xff]   ;;  %v2095_v54 = vld [vmem:[%s2153_s26 + $0xd0] sm:$0xff]  }
  0x22   : > { %1928 = vmatmul.mubr.msk.bf16.gmra.mrb[8].mxu0 %vm436_vm0, %v2052_v11  ;;  %v2096_v55 = vld [vmem:[%s2148_s23 + $0xd8] sm:$0xff]   ;;  %v2270_v2 = vld [vmem:[%s2368_s3] ss:$0 sm:$0xff] }
  0x23   : > { %1986 = vmatmul.mubr.msk.bf16.gmra.mrb[8].mxu1 %vm436_vm0, %v2053_v12  ;;  %1931 = vmatprep.mubr.msk.bf16.mxu0 %vm436_vm0, %v2054_v13  ;;  %v2097_v56 = vld [vmem:[%s2153_s26 + $0xd8] sm:$0xff]  }
  0x24   : > { %1989 = vmatprep.mubr.msk.bf16.mxu1 %vm436_vm0, %v2055_v14 }
  0x2a   : > { %1932 = vmatmul.mubr.msk.bf16.gmra.mrb[12].mxu0 %vm436_vm0, %v2056_v15 }
  0x2b   : > { %1990 = vmatmul.mubr.msk.bf16.gmra.mrb[12].mxu1 %vm436_vm0, %v2057_v16  ;;  %1935 = vmatprep.mubr.msk.bf16.mxu0 %vm436_vm0, %v2058_v17 }
  0x2c   : > { %1993 = vmatprep.mubr.msk.bf16.mxu1 %vm436_vm0, %v2059_v18 }
  0x32   : > { %1936 = vmatmul.mubr.msk.bf16.gmra.mrb[16].mxu0 %vm436_vm0, %v2060_v19 }
  0x33   : > { %1994 = vmatmul.mubr.msk.bf16.gmra.mrb[16].mxu1 %vm436_vm0, %v2061_v20  ;;  %1939 = vmatprep.mubr.msk.bf16.mxu0 %vm436_vm0, %v2062_v21 }
  0x34   : > { %1997 = vmatprep.mubr.msk.bf16.mxu1 %vm436_vm0, %v2063_v22 }
  0x3a   : > { %1940 = vmatmul.mubr.msk.bf16.gmra.mrb[20].mxu0 %vm436_vm0, %v2064_v23 }
  0x3b   : > { %1998 = vmatmul.mubr.msk.bf16.gmra.mrb[20].mxu1 %vm436_vm0, %v2065_v24  ;;  %1943 = vmatprep.mubr.msk.bf16.mxu0 %vm436_vm0, %v2066_v25 }
  0x3c   : > { %2001 = vmatprep.mubr.msk.bf16.mxu1 %vm436_vm0, %v2067_v26 }
  0x42   : > { %1944 = vmatmul.mubr.msk.bf16.gmra.mrb[24].mxu0 %vm436_vm0, %v2068_v27 }
  0x43   : > { %2002 = vmatmul.mubr.msk.bf16.gmra.mrb[24].mxu1 %vm436_vm0, %v2069_v28  ;;  %1947 = vmatprep.mubr.msk.bf16.mxu0 %vm436_vm0, %v2070_v29 }
  0x44   : > { %2005 = vmatprep.mubr.msk.bf16.mxu1 %vm436_vm0, %v2071_v30 }
  0x4a   : > { %1948 = vmatmul.mubr.msk.bf16.gmra.mrb[28].mxu0 %vm436_vm0, %v2072_v31 }
  0x4b   : > { %2006 = vmatmul.mubr.msk.bf16.gmra.mrb[28].mxu1 %vm436_vm0, %v2073_v32  ;;  %1951 = vmatprep.mubr.msk.bf16.mxu0 %vm436_vm0, %v2074_v33 }
  0x4c   : > { %2009 = vmatprep.mubr.msk.bf16.mxu1 %vm436_vm0, %v2075_v34 }
  0x52   : > { %1952 = vmatmul.mubr.msk.bf16.gmra.mrb[32].mxu0 %vm436_vm0, %v2076_v35 }
  0x53   : > { %2010 = vmatmul.mubr.msk.bf16.gmra.mrb[32].mxu1 %vm436_vm0, %v2077_v36  ;;  %1955 = vmatprep.mubr.msk.bf16.mxu0 %vm436_vm0, %v2078_v37 }
  0x54   : > { %2013 = vmatprep.mubr.msk.bf16.mxu1 %vm436_vm0, %v2079_v38 }
  0x5a   : > { %1956 = vmatmul.mubr.msk.bf16.gmra.mrb[36].mxu0 %vm436_vm0, %v2080_v39 }
  0x5b   : > { %2014 = vmatmul.mubr.msk.bf16.gmra.mrb[36].mxu1 %vm436_vm0, %v2081_v40  ;;  %1959 = vmatprep.mubr.msk.bf16.mxu0 %vm436_vm0, %v2082_v41 }
  0x5c   : > { %2017 = vmatprep.mubr.msk.bf16.mxu1 %vm436_vm0, %v2083_v42 }
  0x62   : > { %1960 = vmatmul.mubr.msk.bf16.gmra.mrb[40].mxu0 %vm436_vm0, %v2084_v43 }
  0x63   : > { %2018 = vmatmul.mubr.msk.bf16.gmra.mrb[40].mxu1 %vm436_vm0, %v2085_v44  ;;  %1963 = vmatprep.mubr.msk.bf16.mxu0 %vm436_vm0, %v2086_v45 }
  0x64   : > { %2021 = vmatprep.mubr.msk.bf16.mxu1 %vm436_vm0, %v2087_v46 }
  0x6a   : > { %1964 = vmatmul.mubr.msk.bf16.gmra.mrb[44].mxu0 %vm436_vm0, %v2088_v47 }
  0x6b   : > { %2022 = vmatmul.mubr.msk.bf16.gmra.mrb[44].mxu1 %vm436_vm0, %v2089_v48  ;;  %1967 = vmatprep.mubr.msk.bf16.mxu0 %vm436_vm0, %v2090_v49 }
  0x6c   : > { %2025 = vmatprep.mubr.msk.bf16.mxu1 %vm436_vm0, %v2091_v50 }
  0x72   : > { %1968 = vmatmul.mubr.msk.bf16.gmra.mrb[48].mxu0 %vm436_vm0, %v2092_v51 }
  0x73   : > { %2026 = vmatmul.mubr.msk.bf16.gmra.mrb[48].mxu1 %vm436_vm0, %v2093_v52  ;;  %1971 = vmatprep.mubr.msk.bf16.mxu0 %vm436_vm0, %v2094_v53 }
  0x74   : > { %2029 = vmatprep.mubr.msk.bf16.mxu1 %vm436_vm0, %v2095_v54 }
  0x7a   : > { %1972 = vmatmul.mubr.msk.bf16.gmra.mrb[52].mxu0 %vm436_vm0, %v2096_v55 }
  0x7b   : > { %2030 = vmatmul.mubr.msk.bf16.gmra.mrb[52].mxu1 %vm436_vm0, %v2097_v56 }
  0xe5   : > { %v1921_v57 = vpop.f32.mrb[0].mxu0 }
  0xe6   : > { %v1979_v58 = vpop.f32.mrb[0].mxu1  ;;  %v555_v59 = vpop.f32.mrb[1].mxu0 }
  0xe7   : > { %v1317_v60 = vmax.f32 %v1921_v57, %v1979_v58  ;;  %v1092_v61 = vpop.f32.mrb[1].mxu1  ;;  %v1922_v62 = vpop.f32.mrb[2].mxu0 }
  0xe8   : > { %v1315_v63 = vmax.f32 %v555_v59, %v1092_v61  ;;  %v1980_v0 = vpop.f32.mrb[2].mxu1  ;;  %v558_v1 = vpop.f32.mrb[3].mxu0 }
  0xe9   : > { %v1318_v3 = vmax.f32 %v1922_v62, %v1980_v0  ;;  %v1095_v4 = vpop.f32.mrb[3].mxu1 }
  0xea   : > { %v1371_v5 = vmax.f32 %v1315_v63, %v1317_v60  ;;  %v1316_v6 = vmax.f32 %v558_v1, %v1095_v4 }
  0xec   : > { %v1406_v7 = vadd.f32 %v2270_v2, %v1371_v5  ;;  %v1372_v8 = vmax.f32 %v1316_v6, %v1318_v3 }
  0xed   : > { %v1925_v9 = vpop.f32.mrb[4].mxu0 }
  0xee   : > { %v1434_v10 = vmax.f32 %v1406_v7, 0.0  ;;  %v1407_v11 = vadd.f32 %v2270_v2, %v1372_v8  ;;  %v1983_v12 = vpop.f32.mrb[4].mxu1  ;;  %v571_v13 = vpop.f32.mrb[5].mxu0 }
  0xef   : > { %v1321_v14 = vmax.f32 %v1925_v9, %v1983_v12  ;;  %v1108_v15 = vpop.f32.mrb[5].mxu1  ;;  %v1926_v16 = vpop.f32.mrb[6].mxu0 }
  0xf0   : > { %v1831_v17 = vpack.c.bf16 %v1434_v10, %v1434_v10  ;;  %v1435_v18 = vmax.f32 %v1407_v11, 0.0  ;;  %v1319_v19 = vmax.f32 %v571_v13, %v1108_v15  ;;  %v1984_v20 = vpop.f32.mrb[6].mxu1  ;;  %v574_v21 = vpop.f32.mrb[7].mxu0 }
  0xf1   : > { %v1322_v22 = vmax.f32 %v1926_v16, %v1984_v20  ;;  %v1111_v23 = vpop.f32.mrb[7].mxu1 }
  0xf2   : > { %1575 = vst.msk [vmem:[%s2278_s6] sm:$0xf] %vm1574_vm1, %v1831_v17  ;;  %v1832_v24 = vpack.c.bf16 %v1435_v18, %v1435_v18  ;;  %v1373_v25 = vmax.f32 %v1319_v19, %v1321_v14  ;;  %v1320_v26 = vmax.f32 %v574_v21, %v1111_v23 }
  0xf4   : > { %1576 = vst.msk [vmem:[%s2278_s6 + $0x4] sm:$0xf] %vm1574_vm1, %v1832_v24  ;;  %v1408_v27 = vadd.f32 %v2270_v2, %v1373_v25  ;;  %v1374_v28 = vmax.f32 %v1320_v26, %v1322_v22 }
  0xf5   : > { %v1929_v29 = vpop.f32.mrb[8].mxu0 }
  0xf6   : > { %v1436_v30 = vmax.f32 %v1408_v27, 0.0  ;;  %v1409_v31 = vadd.f32 %v2270_v2, %v1374_v28  ;;  %v1987_v32 = vpop.f32.mrb[8].mxu1  ;;  %v587_v33 = vpop.f32.mrb[9].mxu0 }
  0xf7   : > { %v1325_v34 = vmax.f32 %v1929_v29, %v1987_v32  ;;  %v1124_v35 = vpop.f32.mrb[9].mxu1  ;;  %v1930_v36 = vpop.f32.mrb[10].mxu0 }
  0xf8   : > { %v1833_v37 = vpack.c.bf16 %v1436_v30, %v1436_v30  ;;  %v1437_v38 = vmax.f32 %v1409_v31, 0.0  ;;  %v1323_v39 = vmax.f32 %v587_v33, %v1124_v35  ;;  %v1988_v40 = vpop.f32.mrb[10].mxu1  ;;  %v590_v41 = vpop.f32.mrb[11].mxu0 }
  0xf9   : > { %v1326_v42 = vmax.f32 %v1930_v36, %v1988_v40  ;;  %v1127_v43 = vpop.f32.mrb[11].mxu1 }
  0xfa   : > { %1577 = vst.msk [vmem:[%s2278_s6 + $0x8] sm:$0xf] %vm1574_vm1, %v1833_v37  ;;  %v1834_v44 = vpack.c.bf16 %v1437_v38, %v1437_v38  ;;  %v1375_v45 = vmax.f32 %v1323_v39, %v1325_v34  ;;  %v1324_v46 = vmax.f32 %v590_v41, %v1127_v43 }
  0xfc   : > { %1578 = vst.msk [vmem:[%s2278_s6 + $0xc] sm:$0xf] %vm1574_vm1, %v1834_v44  ;;  %v1410_v47 = vadd.f32 %v2270_v2, %v1375_v45  ;;  %v1376_v48 = vmax.f32 %v1324_v46, %v1326_v42 }
  0xfd   : > { %v1933_v49 = vpop.f32.mrb[12].mxu0 }
  0xfe   : > { %v1438_v50 = vmax.f32 %v1410_v47, 0.0  ;;  %v1411_v51 = vadd.f32 %v2270_v2, %v1376_v48  ;;  %v1991_v52 = vpop.f32.mrb[12].mxu1  ;;  %v603_v53 = vpop.f32.mrb[13].mxu0 }
  0xff   : > { %v1329_v54 = vmax.f32 %v1933_v49, %v1991_v52  ;;  %v1140_v55 = vpop.f32.mrb[13].mxu1  ;;  %v1934_v56 = vpop.f32.mrb[14].mxu0 }
 0x100   : > { %v1835_v57 = vpack.c.bf16 %v1438_v50, %v1438_v50  ;;  %v1439_v58 = vmax.f32 %v1411_v51, 0.0  ;;  %v1327_v59 = vmax.f32 %v603_v53, %v1140_v55  ;;  %v1992_v60 = vpop.f32.mrb[14].mxu1  ;;  %v606_v61 = vpop.f32.mrb[15].mxu0 }
 0x101   : > { %v1330_v62 = vmax.f32 %v1934_v56, %v1992_v60  ;;  %v1143_v63 = vpop.f32.mrb[15].mxu1 }
 0x102   : > { %1579 = vst.msk [vmem:[%s2278_s6 + $0x10] sm:$0xf] %vm1574_vm1, %v1835_v57  ;;  %v1836_v0 = vpack.c.bf16 %v1439_v58, %v1439_v58  ;;  %v1377_v1 = vmax.f32 %v1327_v59, %v1329_v54  ;;  %v1328_v3 = vmax.f32 %v606_v61, %v1143_v63 }
 0x104   : > { %1580 = vst.msk [vmem:[%s2278_s6 + $0x14] sm:$0xf] %vm1574_vm1, %v1836_v0  ;;  %v1412_v4 = vadd.f32 %v2270_v2, %v1377_v1  ;;  %v1378_v5 = vmax.f32 %v1328_v3, %v1330_v62 }
 0x105   : > { %v1937_v6 = vpop.f32.mrb[16].mxu0 }
 0x106   : > { %v1440_v7 = vmax.f32 %v1412_v4, 0.0  ;;  %v1413_v8 = vadd.f32 %v2270_v2, %v1378_v5  ;;  %v1995_v9 = vpop.f32.mrb[16].mxu1  ;;  %v619_v10 = vpop.f32.mrb[17].mxu0 }
 0x107   : > { %v1333_v11 = vmax.f32 %v1937_v6, %v1995_v9  ;;  %v1156_v12 = vpop.f32.mrb[17].mxu1  ;;  %v1938_v13 = vpop.f32.mrb[18].mxu0 }
 0x108   : > { %v1837_v14 = vpack.c.bf16 %v1440_v7, %v1440_v7  ;;  %v1441_v15 = vmax.f32 %v1413_v8, 0.0  ;;  %v1331_v16 = vmax.f32 %v619_v10, %v1156_v12  ;;  %v1996_v17 = vpop.f32.mrb[18].mxu1  ;;  %v622_v18 = vpop.f32.mrb[19].mxu0 }
 0x109   : > { %v1334_v19 = vmax.f32 %v1938_v13, %v1996_v17  ;;  %v1159_v20 = vpop.f32.mrb[19].mxu1 }
 0x10a   : > { %1581 = vst.msk [vmem:[%s2278_s6 + $0x18] sm:$0xf] %vm1574_vm1, %v1837_v14  ;;  %v1838_v21 = vpack.c.bf16 %v1441_v15, %v1441_v15  ;;  %v1379_v22 = vmax.f32 %v1331_v16, %v1333_v11  ;;  %v1332_v23 = vmax.f32 %v622_v18, %v1159_v20 }
 0x10c   : > { %1582 = vst.msk [vmem:[%s2278_s6 + $0x1c] sm:$0xf] %vm1574_vm1, %v1838_v21  ;;  %v1414_v24 = vadd.f32 %v2270_v2, %v1379_v22  ;;  %v1380_v25 = vmax.f32 %v1332_v23, %v1334_v19 }
 0x10d   : > { %v1941_v26 = vpop.f32.mrb[20].mxu0 }
 0x10e   : > { %v1442_v27 = vmax.f32 %v1414_v24, 0.0  ;;  %v1415_v28 = vadd.f32 %v2270_v2, %v1380_v25  ;;  %v1999_v29 = vpop.f32.mrb[20].mxu1  ;;  %v635_v30 = vpop.f32.mrb[21].mxu0 }
 0x10f   : > { %v1337_v31 = vmax.f32 %v1941_v26, %v1999_v29  ;;  %v1172_v32 = vpop.f32.mrb[21].mxu1  ;;  %v1942_v33 = vpop.f32.mrb[22].mxu0 }
 0x110   : > { %v1839_v34 = vpack.c.bf16 %v1442_v27, %v1442_v27  ;;  %v1443_v35 = vmax.f32 %v1415_v28, 0.0  ;;  %v1335_v36 = vmax.f32 %v635_v30, %v1172_v32  ;;  %v2000_v37 = vpop.f32.mrb[22].mxu1  ;;  %v638_v38 = vpop.f32.mrb[23].mxu0 }
 0x111   : > { %v1338_v39 = vmax.f32 %v1942_v33, %v2000_v37  ;;  %v1175_v40 = vpop.f32.mrb[23].mxu1 }
 0x112   : > { %1583 = vst.msk [vmem:[%s2278_s6 + $0x20] sm:$0xf] %vm1574_vm1, %v1839_v34  ;;  %v1840_v41 = vpack.c.bf16 %v1443_v35, %v1443_v35  ;;  %v1381_v42 = vmax.f32 %v1335_v36, %v1337_v31  ;;  %v1336_v43 = vmax.f32 %v638_v38, %v1175_v40 }
 0x114   : > { %1584 = vst.msk [vmem:[%s2278_s6 + $0x24] sm:$0xf] %vm1574_vm1, %v1840_v41  ;;  %v1416_v44 = vadd.f32 %v2270_v2, %v1381_v42  ;;  %v1382_v45 = vmax.f32 %v1336_v43, %v1338_v39 }
 0x115   : > { %v1945_v46 = vpop.f32.mrb[24].mxu0 }
 0x116   : > { %v1444_v47 = vmax.f32 %v1416_v44, 0.0  ;;  %v1417_v48 = vadd.f32 %v2270_v2, %v1382_v45  ;;  %v2003_v49 = vpop.f32.mrb[24].mxu1  ;;  %v651_v50 = vpop.f32.mrb[25].mxu0 }
 0x117   : > { %v1341_v51 = vmax.f32 %v1945_v46, %v2003_v49  ;;  %v1188_v52 = vpop.f32.mrb[25].mxu1  ;;  %v1946_v53 = vpop.f32.mrb[26].mxu0 }
 0x118   : > { %v1841_v54 = vpack.c.bf16 %v1444_v47, %v1444_v47  ;;  %v1445_v55 = vmax.f32 %v1417_v48, 0.0  ;;  %v1339_v56 = vmax.f32 %v651_v50, %v1188_v52  ;;  %v2004_v57 = vpop.f32.mrb[26].mxu1  ;;  %v654_v58 = vpop.f32.mrb[27].mxu0 }
 0x119   : > { %v1342_v59 = vmax.f32 %v1946_v53, %v2004_v57  ;;  %v1191_v60 = vpop.f32.mrb[27].mxu1 }
 0x11a   : > { %1585 = vst.msk [vmem:[%s2278_s6 + $0x28] sm:$0xf] %vm1574_vm1, %v1841_v54  ;;  %v1842_v61 = vpack.c.bf16 %v1445_v55, %v1445_v55  ;;  %v1383_v62 = vmax.f32 %v1339_v56, %v1341_v51  ;;  %v1340_v63 = vmax.f32 %v654_v58, %v1191_v60 }
 0x11c   : > { %1586 = vst.msk [vmem:[%s2278_s6 + $0x2c] sm:$0xf] %vm1574_vm1, %v1842_v61  ;;  %v1418_v0 = vadd.f32 %v2270_v2, %v1383_v62  ;;  %v1384_v1 = vmax.f32 %v1340_v63, %v1342_v59 }
 0x11d   : > { %v1949_v3 = vpop.f32.mrb[28].mxu0 }
 0x11e   : > { %v1446_v4 = vmax.f32 %v1418_v0, 0.0  ;;  %v1419_v5 = vadd.f32 %v2270_v2, %v1384_v1  ;;  %v2007_v6 = vpop.f32.mrb[28].mxu1  ;;  %v667_v7 = vpop.f32.mrb[29].mxu0 }
 0x11f   : > { %v1345_v8 = vmax.f32 %v1949_v3, %v2007_v6  ;;  %v1204_v9 = vpop.f32.mrb[29].mxu1  ;;  %v1950_v10 = vpop.f32.mrb[30].mxu0 }
 0x120   : > { %v1843_v11 = vpack.c.bf16 %v1446_v4, %v1446_v4  ;;  %v1447_v12 = vmax.f32 %v1419_v5, 0.0  ;;  %v1343_v13 = vmax.f32 %v667_v7, %v1204_v9  ;;  %v2008_v14 = vpop.f32.mrb[30].mxu1  ;;  %v670_v15 = vpop.f32.mrb[31].mxu0 }
 0x121   : > { %v1346_v16 = vmax.f32 %v1950_v10, %v2008_v14  ;;  %v1207_v17 = vpop.f32.mrb[31].mxu1 }
 0x122   : > { %1587 = vst.msk [vmem:[%s2278_s6 + $0x30] sm:$0xf] %vm1574_vm1, %v1843_v11  ;;  %v1844_v18 = vpack.c.bf16 %v1447_v12, %v1447_v12  ;;  %v1385_v19 = vmax.f32 %v1343_v13, %v1345_v8  ;;  %v1344_v20 = vmax.f32 %v670_v15, %v1207_v17 }
 0x124   : > { %1588 = vst.msk [vmem:[%s2278_s6 + $0x34] sm:$0xf] %vm1574_vm1, %v1844_v18  ;;  %v1420_v21 = vadd.f32 %v2270_v2, %v1385_v19  ;;  %v1386_v22 = vmax.f32 %v1344_v20, %v1346_v16 }
 0x125   : > { %v1953_v23 = vpop.f32.mrb[32].mxu0 }
 0x126   : > { %v1448_v24 = vmax.f32 %v1420_v21, 0.0  ;;  %v1421_v25 = vadd.f32 %v2270_v2, %v1386_v22  ;;  %v2011_v26 = vpop.f32.mrb[32].mxu1  ;;  %v683_v27 = vpop.f32.mrb[33].mxu0 }
 0x127   : > { %v1349_v28 = vmax.f32 %v1953_v23, %v2011_v26  ;;  %v1220_v29 = vpop.f32.mrb[33].mxu1  ;;  %v1954_v30 = vpop.f32.mrb[34].mxu0 }
 0x128   : > { %v1845_v31 = vpack.c.bf16 %v1448_v24, %v1448_v24  ;;  %v1449_v32 = vmax.f32 %v1421_v25, 0.0  ;;  %v1347_v33 = vmax.f32 %v683_v27, %v1220_v29  ;;  %v2012_v34 = vpop.f32.mrb[34].mxu1  ;;  %v686_v35 = vpop.f32.mrb[35].mxu0 }
 0x129   : > { %v1350_v36 = vmax.f32 %v1954_v30, %v2012_v34  ;;  %v1223_v37 = vpop.f32.mrb[35].mxu1 }
 0x12a   : > { %1589 = vst.msk [vmem:[%s2278_s6 + $0x38] sm:$0xf] %vm1574_vm1, %v1845_v31  ;;  %v1846_v38 = vpack.c.bf16 %v1449_v32, %v1449_v32  ;;  %v1387_v39 = vmax.f32 %v1347_v33, %v1349_v28  ;;  %v1348_v40 = vmax.f32 %v686_v35, %v1223_v37 }
 0x12c   : > { %1590 = vst.msk [vmem:[%s2278_s6 + $0x3c] sm:$0xf] %vm1574_vm1, %v1846_v38  ;;  %v1422_v41 = vadd.f32 %v2270_v2, %v1387_v39  ;;  %v1388_v42 = vmax.f32 %v1348_v40, %v1350_v36 }
 0x12d   : > { %v1957_v43 = vpop.f32.mrb[36].mxu0 }
 0x12e   : > { %v1450_v44 = vmax.f32 %v1422_v41, 0.0  ;;  %v1423_v45 = vadd.f32 %v2270_v2, %v1388_v42  ;;  %v2015_v46 = vpop.f32.mrb[36].mxu1  ;;  %v699_v47 = vpop.f32.mrb[37].mxu0 }
 0x12f   : > { %v1353_v48 = vmax.f32 %v1957_v43, %v2015_v46  ;;  %v1236_v49 = vpop.f32.mrb[37].mxu1  ;;  %v1958_v50 = vpop.f32.mrb[38].mxu0 }
 0x130   : > { %v1847_v51 = vpack.c.bf16 %v1450_v44, %v1450_v44  ;;  %v1451_v52 = vmax.f32 %v1423_v45, 0.0  ;;  %v1351_v53 = vmax.f32 %v699_v47, %v1236_v49  ;;  %v2016_v54 = vpop.f32.mrb[38].mxu1  ;;  %v702_v55 = vpop.f32.mrb[39].mxu0 }
 0x131   : > { %v1354_v56 = vmax.f32 %v1958_v50, %v2016_v54  ;;  %v1239_v57 = vpop.f32.mrb[39].mxu1 }
 0x132   : > { %1591 = vst.msk [vmem:[%s2278_s6 + $0x40] sm:$0xf] %vm1574_vm1, %v1847_v51  ;;  %v1848_v58 = vpack.c.bf16 %v1451_v52, %v1451_v52  ;;  %v1389_v59 = vmax.f32 %v1351_v53, %v1353_v48  ;;  %v1352_v60 = vmax.f32 %v702_v55, %v1239_v57 }
 0x134   : > { %1592 = vst.msk [vmem:[%s2278_s6 + $0x44] sm:$0xf] %vm1574_vm1, %v1848_v58  ;;  %v1424_v61 = vadd.f32 %v2270_v2, %v1389_v59  ;;  %v1390_v62 = vmax.f32 %v1352_v60, %v1354_v56 }
 0x135   : > { %v1961_v63 = vpop.f32.mrb[40].mxu0 }
 0x136   : > { %v1452_v0 = vmax.f32 %v1424_v61, 0.0  ;;  %v1425_v1 = vadd.f32 %v2270_v2, %v1390_v62  ;;  %v2019_v3 = vpop.f32.mrb[40].mxu1  ;;  %v715_v4 = vpop.f32.mrb[41].mxu0 }
 0x137   : > { %v1357_v5 = vmax.f32 %v1961_v63, %v2019_v3  ;;  %v1252_v6 = vpop.f32.mrb[41].mxu1  ;;  %v1962_v7 = vpop.f32.mrb[42].mxu0 }
 0x138   : > { %v1849_v8 = vpack.c.bf16 %v1452_v0, %v1452_v0  ;;  %v1453_v9 = vmax.f32 %v1425_v1, 0.0  ;;  %v1355_v10 = vmax.f32 %v715_v4, %v1252_v6  ;;  %v2020_v11 = vpop.f32.mrb[42].mxu1  ;;  %v718_v12 = vpop.f32.mrb[43].mxu0 }
 0x139   : > { %v1358_v13 = vmax.f32 %v1962_v7, %v2020_v11  ;;  %v1255_v14 = vpop.f32.mrb[43].mxu1 }
 0x13a   : > { %1593 = vst.msk [vmem:[%s2278_s6 + $0x48] sm:$0xf] %vm1574_vm1, %v1849_v8  ;;  %v1850_v15 = vpack.c.bf16 %v1453_v9, %v1453_v9  ;;  %v1391_v16 = vmax.f32 %v1355_v10, %v1357_v5  ;;  %v1356_v17 = vmax.f32 %v718_v12, %v1255_v14 }
 0x13c   : > { %1594 = vst.msk [vmem:[%s2278_s6 + $0x4c] sm:$0xf] %vm1574_vm1, %v1850_v15  ;;  %v1426_v18 = vadd.f32 %v2270_v2, %v1391_v16  ;;  %v1392_v19 = vmax.f32 %v1356_v17, %v1358_v13 }
 0x13d   : > { %v1965_v20 = vpop.f32.mrb[44].mxu0 }
 0x13e   : > { %v1454_v21 = vmax.f32 %v1426_v18, 0.0  ;;  %v1427_v22 = vadd.f32 %v2270_v2, %v1392_v19  ;;  %v2023_v23 = vpop.f32.mrb[44].mxu1  ;;  %v731_v24 = vpop.f32.mrb[45].mxu0 }
 0x13f   : > { %v1361_v25 = vmax.f32 %v1965_v20, %v2023_v23  ;;  %v1268_v26 = vpop.f32.mrb[45].mxu1  ;;  %v1966_v27 = vpop.f32.mrb[46].mxu0 }
 0x140   : > { %v1851_v28 = vpack.c.bf16 %v1454_v21, %v1454_v21  ;;  %v1455_v29 = vmax.f32 %v1427_v22, 0.0  ;;  %v1359_v30 = vmax.f32 %v731_v24, %v1268_v26  ;;  %v2024_v31 = vpop.f32.mrb[46].mxu1  ;;  %v734_v32 = vpop.f32.mrb[47].mxu0 }
 0x141   : > { %v1362_v33 = vmax.f32 %v1966_v27, %v2024_v31  ;;  %v1271_v34 = vpop.f32.mrb[47].mxu1 }
 0x142   : > { %1595 = vst.msk [vmem:[%s2278_s6 + $0x50] sm:$0xf] %vm1574_vm1, %v1851_v28  ;;  %v1852_v35 = vpack.c.bf16 %v1455_v29, %v1455_v29  ;;  %v1393_v36 = vmax.f32 %v1359_v30, %v1361_v25  ;;  %v1360_v37 = vmax.f32 %v734_v32, %v1271_v34 }
 0x144   : > { %1596 = vst.msk [vmem:[%s2278_s6 + $0x54] sm:$0xf] %vm1574_vm1, %v1852_v35  ;;  %v1428_v38 = vadd.f32 %v2270_v2, %v1393_v36  ;;  %v1394_v39 = vmax.f32 %v1360_v37, %v1362_v33 }
 0x145   : > { %v1969_v40 = vpop.f32.mrb[48].mxu0 }
 0x146   : > { %v1456_v41 = vmax.f32 %v1428_v38, 0.0  ;;  %v1429_v42 = vadd.f32 %v2270_v2, %v1394_v39  ;;  %v2027_v43 = vpop.f32.mrb[48].mxu1  ;;  %v747_v44 = vpop.f32.mrb[49].mxu0 }
 0x147   : > { %v1365_v45 = vmax.f32 %v1969_v40, %v2027_v43  ;;  %v1284_v46 = vpop.f32.mrb[49].mxu1  ;;  %v1970_v47 = vpop.f32.mrb[50].mxu0 }
 0x148   : > { %v1853_v48 = vpack.c.bf16 %v1456_v41, %v1456_v41  ;;  %v1457_v49 = vmax.f32 %v1429_v42, 0.0  ;;  %v1363_v50 = vmax.f32 %v747_v44, %v1284_v46  ;;  %v2028_v51 = vpop.f32.mrb[50].mxu1  ;;  %v750_v52 = vpop.f32.mrb[51].mxu0 }
 0x149   : > { %v1366_v53 = vmax.f32 %v1970_v47, %v2028_v51  ;;  %v1287_v54 = vpop.f32.mrb[51].mxu1 }
 0x14a   : > { %1597 = vst.msk [vmem:[%s2278_s6 + $0x58] sm:$0xf] %vm1574_vm1, %v1853_v48  ;;  %v1854_v55 = vpack.c.bf16 %v1457_v49, %v1457_v49  ;;  %v1395_v56 = vmax.f32 %v1363_v50, %v1365_v45  ;;  %v1364_v57 = vmax.f32 %v750_v52, %v1287_v54 }
 0x14c   : > { %1598 = vst.msk [vmem:[%s2278_s6 + $0x5c] sm:$0xf] %vm1574_vm1, %v1854_v55  ;;  %v1430_v58 = vadd.f32 %v2270_v2, %v1395_v56  ;;  %v1396_v59 = vmax.f32 %v1364_v57, %v1366_v53 }
 0x14d   : > { %v1973_v60 = vpop.f32.mrb[52].mxu0 }
 0x14e   : > { %v1458_v61 = vmax.f32 %v1430_v58, 0.0  ;;  %v1431_v62 = vadd.f32 %v2270_v2, %v1396_v59  ;;  %v2031_v63 = vpop.f32.mrb[52].mxu1  ;;  %v763_v0 = vpop.f32.mrb[53].mxu0 }
 0x14f   : > { %v1369_v1 = vmax.f32 %v1973_v60, %v2031_v63  ;;  %v1300_v3 = vpop.f32.mrb[53].mxu1  ;;  %v1974_v4 = vpop.f32.mrb[54].mxu0 }
 0x150   : > { %v1855_v5 = vpack.c.bf16 %v1458_v61, %v1458_v61  ;;  %v1459_v6 = vmax.f32 %v1431_v62, 0.0  ;;  %v1367_v7 = vmax.f32 %v763_v0, %v1300_v3  ;;  %v2032_v8 = vpop.f32.mrb[54].mxu1  ;;  %v766_v9 = vpop.f32.mrb[55].mxu0 }
 0x151   : > { %v1370_v10 = vmax.f32 %v1974_v4, %v2032_v8  ;;  %v1303_v11 = vpop.f32.mrb[55].mxu1 }
 0x152   : > { %1599 = vst.msk [vmem:[%s2278_s6 + $0x60] sm:$0xf] %vm1574_vm1, %v1855_v5  ;;  %v1856_v12 = vpack.c.bf16 %v1459_v6, %v1459_v6  ;;  %v1397_v13 = vmax.f32 %v1367_v7, %v1369_v1  ;;  %v1368_v14 = vmax.f32 %v766_v9, %v1303_v11 }
 0x154   : > { %1600 = vst.msk [vmem:[%s2278_s6 + $0x64] sm:$0xf] %vm1574_vm1, %v1856_v12  ;;  %v1432_v15 = vadd.f32 %v2270_v2, %v1397_v13  ;;  %v1398_v16 = vmax.f32 %v1368_v14, %v1370_v10 }
 0x156   : > { %v1460_v17 = vmax.f32 %v1432_v15, 0.0  ;;  %v1433_v18 = vadd.f32 %v2270_v2, %v1398_v16 }
 0x158   : > { %v1857_v19 = vpack.c.bf16 %v1460_v17, %v1460_v17  ;;  %v1461_v20 = vmax.f32 %v1433_v18, 0.0 }
 0x15a   : > { %1601 = vst.msk [vmem:[%s2278_s6 + $0x68] sm:$0xf] %vm1574_vm1, %v1857_v19  ;;  %v1858_v21 = vpack.c.bf16 %v1461_v20, %v1461_v20 }
 0x15c   : > { %1602 = vst.msk [vmem:[%s2278_s6 + $0x6c] sm:$0xf] %vm1574_vm1, %v1858_v21 }
 0x15d PF: > { %s14_s15 = sadd.s32 1, %s2104_s15  }
 0x15e   : > { %p11_p4 = scmp.ge.s32.totalorder %s14_s15, 4  }
 0x160   :  { %13 = sbr.rel (!%p11_p4) target bundleno = 1 (0x1), region = 69 }

// kernel: mnist_net_forward.4
= control target key start
LH: loop header
LB: loop body
LE: loop exit
PB: predicated region body
PF: predicated region fallthrough
CT: control target
= control target key end

     0   :  { %s1571_s15 = smov 0   ;;  %s1827_s0 = inlined_call_operand.vmem [shape: bf16[14,2,8,288], index: 0, kind: input, shape index: {}]   ;;  %s1828_s1 = inlined_call_operand.vmem [shape: bf16[14,2,8,288], index: 1, kind: input, shape index: {}]   ;;  %s1829_s2 = inlined_call_operand.vmem [shape: bf16[288,64], index: 2, kind: input, shape index: {}]   ;;  %s1830_s3 = inlined_call_operand.vmem [shape: f32[1,1,64], index: 3, kind: input, shape index: {}]   ;;  %s1831_s4 = inlined_call_operand.vmem [shape: bf16[14,8,64], index: 4, kind: output, shape index: {}]  }
   0x1 LB: > { %s1164_s16 = sadd.s32 4294967295, %s1542_s15   ;;  %p1168_p0 = scmp.ge.s32.totalorder %s1542_s15, 1  ;;  %s1542_s15 = sphi %s1571_s15, %s14_s15  }
   0x2   : > { %p176_p1 = scmp.lt.s32.totalorder %s1542_s15, 3 }
   0x4   : > { %p177_p2 = pnand %p1168_p0, %p176_p1 }
   0x5   : > { %v1462_v0 = vld [vmem:[%s1829_s2 + $0x40] sm:$0xff] (!%p177_p2)   ;;  %v1544_v2 = vmov (!%p177_p2), 0.0   ;;  %vm1545_vm0 = vmmov (!%p177_p2), 0   ;;  %s209_s23 = smul.u32 (!%p177_p2), 7, %s1164_s16  ;;  %v1465_v4 = vld [vmem:[%s1829_s2 + $0x48] sm:$0xff] (!%p177_p2)   ;;  %v1468_v7 = vld [vmem:[%s1829_s2 + $0x50] sm:$0xff] (!%p177_p2)  }
   0x6   : > { %180 = sbr.rel (%p177_p2) target bundleno = 362 (0x16a), region = 36  ;;  %v1463_v1 = vld [vmem:[%s1829_s2] sm:$0xff] (!%p177_p2)   ;;  %1383 = vmatprep.subr.bf16.mxu1 (!%p177_p2), %v1544_v2  ;;  %1249 = vmatprep.subr.bf16.mxu0 (!%p177_p2), %v1462_v0  ;;  %v1466_v5 = vld [vmem:[%s1829_s2 + $0x8] sm:$0xff] (!%p177_p2)   ;;  %v1469_v8 = vld [vmem:[%s1829_s2 + $0x10] sm:$0xff] (!%p177_p2)   ;;  %vm507_vm1 = vcmask (!%p177_p2), 261120   ;;  %vm1088_vm2 = vcmask (!%p177_p2), 519168  }
   0x7   : > { %v1589_v3 = vld [vmem:[%s1829_s2 + $0x80] sm:$0xff] (!%p177_p2)   ;;  %1387 = vmatprep.mubr.msk.bf16.mxu1 (!%p177_p2), %vm1545_vm0, %v1544_v2  ;;  %1250 = vmatpush3.bf16.msra.mxu0 (!%p177_p2), %v1463_v1  ;;  %p210_p3 = scmp.lt.s32.totalorder (!%p177_p2), %s209_s23, 13  ;;  %v1604_v6 = vld [vmem:[%s1829_s2 + $0x88] sm:$0xff] (!%p177_p2)   ;;  %v1471_v9 = vld [vmem:[%s1829_s2 + $0x58] sm:$0xff] (!%p177_p2)  }
   0x8   : > { %1384 = vmatpush3.bf16.msra.mxu1 (!%p177_p2), %v1589_v3  ;;  %1251 = vmatprep.subr.bf16.mxu0 (!%p177_p2), %v1465_v4  ;;  %v1472_v10 = vld [vmem:[%s1829_s2 + $0x18] sm:$0xff] (!%p177_p2)   ;;  %v1473_v12 = vld [vmem:[%s1829_s2 + $0x60] sm:$0xff] (!%p177_p2)   ;;  %v1476_v14 = vld [vmem:[%s1829_s2 + $0x68] sm:$0xff] (!%p177_p2)  }
   0x9   : > { %1385 = vmatprep.subr.bf16.mxu1 (!%p177_p2), %v1544_v2  ;;  %v1474_v13 = vld [vmem:[%s1829_s2 + $0x20] sm:$0xff] (!%p177_p2)   ;;  %v1477_v16 = vld [vmem:[%s1829_s2 + $0x28] sm:$0xff] (!%p177_p2)   ;;  %v1478_v17 = vld [vmem:[%s1829_s2 + $0x70] sm:$0xff] (!%p177_p2)  }
   0xa   : > { %v1479_v19 = vld [vmem:[%s1829_s2 + $0x30] sm:$0xff] (!%p177_p2)   ;;  %v1481_v20 = vld [vmem:[%s1829_s2 + $0x78] sm:$0xff] (!%p177_p2)  }
   0xb   : > { %1252 = vmatpush3.bf16.msra.mxu0 (!%p177_p2), %v1466_v5  ;;  %v1482_v22 = vld [vmem:[%s1829_s2 + $0x38] sm:$0xff] (!%p177_p2)  }
   0xc   : > { %1386 = vmatpush3.bf16.msra.mxu1 (!%p177_p2), %v1604_v6  ;;  %1253 = vmatprep.subr.bf16.mxu0 (!%p177_p2), %v1468_v7 }
   0xd   : > { %s1833_s23 = smov (!%p210_p3, %s209_s23), 13  ;;  %1316 = vmatprep.subr.bf16.mxu1 %v1462_v0 }
   0xe   : > { %s1451_s8 = smul.u32 24, %s1833_s23 }
   0xf   : > { %1254 = vmatpush3.bf16.msra.mxu0 %v1469_v8 }
  0x10   : > { %s1624_s13 = scalar_lea.vmem %s1827_s0, %s1451_s8  ;;  %1255 = vmatprep.subr.bf16.mxu0 %v1471_v9  ;;  %s1672_s11 = scalar_lea.vmem %s1828_s1, %s1451_s8 }
  0x11   : > { %v1470_v11 = vld [vmem:[%s1624_s13 + $0x8] ss:$12 sps:$4 sm:$0xff]   ;;  %v1475_v15 = vld [vmem:[%s1624_s13 + $0x20] ss:$12 sps:$4 sm:$0xff]   ;;  %v1485_v18 = vld [vmem:[%s1624_s13 + $0x4] ss:$12 sps:$4 sm:$0xff]  }
  0x12   : > { %1388 = vmatmul.mubr.msk.bf16.vlgmr.msra.gmra.mrb[0].mxu1 %vm507_vm1, %v1470_v11  ;;  %561 = vmatprep.mubr.bf16.mxu0 %v1485_v18  ;;  %v1480_v21 = vld [vmem:[%s1624_s13 + $0x38] ss:$12 sps:$4 sm:$0xff]   ;;  %v1483_v23 = vld [vmem:[%s1624_s13] ss:$12 sps:$4 sm:$0xff]   ;;  %v1487_v24 = vld [vmem:[%s1624_s13 + $0x1c] ss:$12 sps:$4 sm:$0xff]  }
  0x13   : > { %1391 = vmatprep.mubr.msk.bf16.mxu1 %vm1545_vm0, %v1544_v2  ;;  %1317 = vmatpush3.bf16.msra.mxu1 %v1463_v1  ;;  %v1486_v25 = vld [vmem:[%s1624_s13 + $0x50] ss:$12 sps:$4 sm:$0xff]   ;;  %v1489_v26 = vld [vmem:[%s1624_s13 + $0x18] ss:$12 sps:$4 sm:$0xff]   ;;  %v1491_v27 = vld [vmem:[%s1624_s13 + $0x34] ss:$12 sps:$4 sm:$0xff]  }
  0x14   : > { %1256 = vmatpush3.bf16.msra.mxu0 %v1472_v10  ;;  %1318 = vmatprep.subr.bf16.mxu1 %v1465_v4  ;;  %v1490_v28 = vld [vmem:[%s1624_s13 + $0x68] ss:$12 sps:$4 sm:$0xff]   ;;  %v1493_v29 = vld [vmem:[%s1624_s13 + $0x30] ss:$12 sps:$4 sm:$0xff]   ;;  %v1495_v30 = vld [vmem:[%s1624_s13 + $0x4c] ss:$12 sps:$4 sm:$0xff]  }
  0x15   : > { %1257 = vmatprep.subr.bf16.mxu0 %v1473_v12  ;;  %v1494_v31 = vld [vmem:[%s1624_s13 + $0x80] ss:$12 sps:$4 sm:$0xff]   ;;  %v1497_v32 = vld [vmem:[%s1624_s13 + $0x48] ss:$12 sps:$4 sm:$0xff]   ;;  %v1499_v33 = vld [vmem:[%s1624_s13 + $0x64] ss:$12 sps:$4 sm:$0xff]  }
  0x16   : > { %v1498_v34 = vld [vmem:[%s1624_s13 + $0x98] ss:$12 sps:$4 sm:$0xff]   ;;  %v1501_v36 = vld [vmem:[%s1624_s13 + $0x60] ss:$12 sps:$4 sm:$0xff]   ;;  %v1505_v37 = vld [vmem:[%s1624_s13 + $0x7c] ss:$12 sps:$4 sm:$0xff]  }
  0x17   : > { %1319 = vmatpush3.bf16.msra.mxu1 %v1466_v5  ;;  %v1504_v35 = vld [vmem:[%s1672_s11 + $0x4] ss:$12 sps:$4 sm:$0xff]   ;;  %v1502_v38 = vld [vmem:[%s1672_s11] ss:$12 sps:$4 sm:$0xff]   ;;  %v1508_v39 = vld [vmem:[%s1672_s11 + $0x1c] ss:$12 sps:$4 sm:$0xff]  }
  0x18   : > { %1258 = vmatpush3.bf16.msra.mxu0 %v1474_v13  ;;  %1320 = vmatprep.subr.bf16.mxu1 %v1468_v7  ;;  %v1507_v40 = vld [vmem:[%s1624_s13 + $0x78] ss:$12 sps:$4 sm:$0xff]   ;;  %v1511_v41 = vld [vmem:[%s1624_s13 + $0x94] ss:$12 sps:$4 sm:$0xff]   ;;  %v1513_v44 = vld [vmem:[%s1624_s13 + $0x90] ss:$12 sps:$4 sm:$0xff]  }
  0x19   : > { %1259 = vmatprep.subr.bf16.mxu0 %v1476_v14  ;;  %v1510_v42 = vld [vmem:[%s1672_s11 + $0x18] ss:$12 sps:$4 sm:$0xff]   ;;  %v1514_v43 = vld [vmem:[%s1672_s11 + $0x34] ss:$12 sps:$4 sm:$0xff]   ;;  %v1516_v45 = vld [vmem:[%s1672_s11 + $0x30] ss:$12 sps:$4 sm:$0xff]  }
  0x1a   : > { %1392 = vmatmul.mubr.msk.bf16.gmra.mrb[4].mxu1 %vm507_vm1, %v1475_v15  ;;  %v1517_v46 = vld [vmem:[%s1672_s11 + $0x4c] ss:$12 sps:$4 sm:$0xff]   ;;  %v1519_v47 = vld [vmem:[%s1672_s11 + $0x8] ss:$12 sps:$4 sm:$0xff]   ;;  %v1521_v49 = vld [vmem:[%s1672_s11 + $0x64] ss:$12 sps:$4 sm:$0xff]  }
  0x1b   : > { %1395 = vmatprep.mubr.msk.bf16.mxu1 %vm1545_vm0, %v1544_v2  ;;  %1321 = vmatpush3.bf16.msra.mxu1 %v1469_v8  ;;  %v1520_v48 = vld [vmem:[%s1672_s11 + $0x48] ss:$12 sps:$4 sm:$0xff]   ;;  %v1523_v50 = vld [vmem:[%s1672_s11 + $0x20] ss:$12 sps:$4 sm:$0xff]   ;;  %v1527_v53 = vld [vmem:[%s1672_s11 + $0x38] ss:$12 sps:$4 sm:$0xff]  }
  0x1c   : > { %1260 = vmatpush3.bf16.msra.mxu0 %v1477_v16  ;;  %1322 = vmatprep.subr.bf16.mxu1 %v1471_v9  ;;  %v1524_v51 = vld [vmem:[%s1672_s11 + $0x60] ss:$12 sps:$4 sm:$0xff]   ;;  %v1525_v52 = vld [vmem:[%s1672_s11 + $0x7c] ss:$12 sps:$4 sm:$0xff]   ;;  %v1528_v54 = vld [vmem:[%s1672_s11 + $0x78] ss:$12 sps:$4 sm:$0xff]  }
  0x1d   : > { %1261 = vmatprep.subr.bf16.mxu0 %v1478_v17  ;;  %v1529_v55 = vld [vmem:[%s1672_s11 + $0x94] ss:$12 sps:$4 sm:$0xff]   ;;  %v1531_v56 = vld [vmem:[%s1672_s11 + $0x50] ss:$12 sps:$4 sm:$0xff]   ;;  %v1534_v59 = vld [vmem:[%s1672_s11 + $0x98] ss:$12 sps:$4 sm:$0xff]  }
  0x1e   : > { %v1532_v57 = vld [vmem:[%s1672_s11 + $0x90] ss:$12 sps:$4 sm:$0xff]   ;;  %v1533_v58 = vld [vmem:[%s1672_s11 + $0x68] ss:$12 sps:$4 sm:$0xff]   ;;  %v1535_v60 = vld [vmem:[%s1672_s11 + $0x80] ss:$12 sps:$4 sm:$0xff]  }
  0x1f   : > { %1323 = vmatpush3.bf16.msra.mxu1 %v1472_v10  ;;  %s1171_s13 = sshll.u32 %s1833_s23, 2 }
  0x20   : > { %1262 = vmatpush3.bf16.msra.mxu0 %v1479_v19  ;;  %1324 = vmatprep.subr.bf16.mxu1 %v1473_v12  ;;  %s1791_s17 = scalar_lea.vmem %s1831_s4, %s1171_s13 }
  0x21   : > { %1263 = vmatprep.subr.bf16.mxu0 %v1481_v20 }
  0x22   : > { %1396 = vmatmul.mubr.msk.bf16.gmra.mrb[8].mxu1 %vm507_vm1, %v1480_v21 }
  0x23   : > { %1399 = vmatprep.mubr.msk.bf16.mxu1 %vm1545_vm0, %v1544_v2  ;;  %1325 = vmatpush3.bf16.msra.mxu1 %v1474_v13 }
  0x24   : > { %1264 = vmatpush3.bf16.msra.mxu0 %v1482_v22  ;;  %1326 = vmatprep.subr.bf16.mxu1 %v1476_v14 }
  0x25   : > { %1415 = vmatprep.subr.bf16.mxu0 %v1544_v2 }
  0x27   : > { %562 = vmatmul.mubr.bf16.vlgmr.msra.gmra.mrb[0].mxu0 %v1483_v23  ;;  %1327 = vmatpush3.bf16.msra.mxu1 %v1477_v16 }
  0x28   : > { %1416 = vmatpush3.bf16.msra.mxu0 %v1589_v3  ;;  %569 = vmatprep.mubr.bf16.mxu0 %v1487_v24 }
  0x29   : > { %1328 = vmatprep.subr.bf16.mxu1 %v1478_v17  ;;  %1417 = vmatprep.subr.bf16.mxu0 %v1544_v2 }
  0x2a   : > { %1400 = vmatmul.mubr.msk.bf16.gmra.mrb[12].mxu1 %vm507_vm1, %v1486_v25 }
  0x2b   : > { %1403 = vmatprep.mubr.msk.bf16.mxu1 %vm1545_vm0, %v1544_v2  ;;  %1329 = vmatpush3.bf16.msra.mxu1 %v1479_v19 }
  0x2c   : > { %1330 = vmatprep.subr.bf16.mxu1 %v1481_v20  ;;  %1418 = vmatpush3.bf16.msra.mxu0 %v1604_v6 }
  0x2f   : > { %570 = vmatmul.mubr.bf16.gmra.mrb[4].mxu0 %v1489_v26  ;;  %1331 = vmatpush3.bf16.msra.mxu1 %v1482_v22 }
  0x30   : > { %577 = vmatprep.mubr.bf16.mxu0 %v1491_v27  ;;  %1447 = vmatprep.subr.bf16.mxu1 %v1544_v2 }
  0x32   : > { %1404 = vmatmul.mubr.msk.bf16.gmra.mrb[16].mxu1 %vm507_vm1, %v1490_v28 }
  0x33   : > { %1407 = vmatprep.mubr.msk.bf16.mxu1 %vm1545_vm0, %v1544_v2 }
  0x37   : > { %578 = vmatmul.mubr.bf16.gmra.mrb[8].mxu0 %v1493_v29 }
  0x38   : > { %585 = vmatprep.mubr.bf16.mxu0 %v1495_v30 }
  0x3a   : > { %1408 = vmatmul.mubr.msk.bf16.gmra.mrb[20].mxu1 %vm507_vm1, %v1494_v31 }
  0x3b   : > { %1411 = vmatprep.mubr.msk.bf16.mxu1 %vm1545_vm0, %v1544_v2 }
  0x3f   : > { %586 = vmatmul.mubr.bf16.gmra.mrb[12].mxu0 %v1497_v32 }
  0x40   : > { %593 = vmatprep.mubr.bf16.mxu0 %v1499_v33 }
  0x42   : > { %1412 = vmatmul.mubr.msk.bf16.gmra.mrb[24].mxu1 %vm507_vm1, %v1498_v34 }
  0x43   : > { %893 = vmatprep.mubr.bf16.mxu1 %v1504_v35 }
  0x47   : > { %594 = vmatmul.mubr.bf16.gmra.mrb[16].mxu0 %v1501_v36 }
  0x48   : > { %601 = vmatprep.mubr.bf16.mxu0 %v1505_v37 }
  0x4a   : > { %894 = vmatmul.mubr.bf16.vlgmr.msra.gmra.mrb[28].mxu1 %v1502_v38 }
  0x4b   : > { %901 = vmatprep.mubr.bf16.mxu1 %v1508_v39  ;;  %1449 = vmatpush3.bf16.msra.mxu1 %v1589_v3 }
  0x4c   : > { %1448 = vmatprep.subr.bf16.mxu1 %v1544_v2 }
  0x4f   : > { %602 = vmatmul.mubr.bf16.gmra.mrb[20].mxu0 %v1507_v40  ;;  %1450 = vmatpush3.bf16.msra.mxu1 %v1604_v6 }
  0x50   : > { %609 = vmatprep.mubr.bf16.mxu0 %v1511_v41 }
  0x52   : > { %902 = vmatmul.mubr.bf16.gmra.mrb[32].mxu1 %v1510_v42 }
  0x53   : > { %909 = vmatprep.mubr.bf16.mxu1 %v1514_v43 }
  0x57   : > { %610 = vmatmul.mubr.bf16.gmra.mrb[24].mxu0 %v1513_v44 }
  0x58   : > { %1419 = vmatprep.mubr.msk.bf16.mxu0 %vm1545_vm0, %v1544_v2 }
  0x5a   : > { %910 = vmatmul.mubr.bf16.gmra.mrb[36].mxu1 %v1516_v45 }
  0x5b   : > { %917 = vmatprep.mubr.bf16.mxu1 %v1517_v46 }
  0x5f   : > { %1420 = vmatmul.mubr.msk.bf16.vlgmr.msra.gmra.mrb[28].mxu0 %vm507_vm1, %v1519_v47 }
  0x60   : > { %1423 = vmatprep.mubr.msk.bf16.mxu0 %vm1545_vm0, %v1544_v2 }
  0x62   : > { %918 = vmatmul.mubr.bf16.gmra.mrb[40].mxu1 %v1520_v48 }
  0x63   : > { %925 = vmatprep.mubr.bf16.mxu1 %v1521_v49 }
  0x67   : > { %1424 = vmatmul.mubr.msk.bf16.gmra.mrb[32].mxu0 %vm507_vm1, %v1523_v50 }
  0x68   : > { %1427 = vmatprep.mubr.msk.bf16.mxu0 %vm1545_vm0, %v1544_v2 }
  0x6a   : > { %926 = vmatmul.mubr.bf16.gmra.mrb[44].mxu1 %v1524_v51 }
  0x6b   : > { %933 = vmatprep.mubr.bf16.mxu1 %v1525_v52 }
  0x6f   : > { %1428 = vmatmul.mubr.msk.bf16.gmra.mrb[36].mxu0 %vm507_vm1, %v1527_v53 }
  0x70   : > { %1431 = vmatprep.mubr.msk.bf16.mxu0 %vm1545_vm0, %v1544_v2 }
  0x72   : > { %934 = vmatmul.mubr.bf16.gmra.mrb[48].mxu1 %v1528_v54 }
  0x73   : > { %941 = vmatprep.mubr.bf16.mxu1 %v1529_v55 }
  0x77   : > { %1432 = vmatmul.mubr.msk.bf16.gmra.mrb[40].mxu0 %vm507_vm1, %v1531_v56 }
  0x78   : > { %1435 = vmatprep.mubr.msk.bf16.mxu0 %vm1545_vm0, %v1544_v2 }
  0x7a   : > { %942 = vmatmul.mubr.bf16.gmra.mrb[52].mxu1 %v1532_v57 }
  0x7b   : > { %1443 = vmatprep.mubr.msk.bf16.mxu1 %vm1545_vm0, %v1544_v2 }
  0x7f   : > { %1436 = vmatmul.mubr.msk.bf16.gmra.mrb[44].mxu0 %vm507_vm1, %v1533_v58 }
  0x80   : > { %1439 = vmatprep.mubr.msk.bf16.mxu0 %vm1545_vm0, %v1544_v2 }
  0x82   : > { %1444 = vmatmul.mubr.msk.bf16.vlgmr.msra.gmra.mrb[56].mxu1 %vm507_vm1, %v1534_v59 }
  0x87   : > { %1440 = vmatmul.mubr.msk.bf16.gmra.mrb[48].mxu0 %vm507_vm1, %v1535_v60 }
  0xe5   : > { %v652_v61 = vpop.f32.mrb[0].mxu1 }
  0xe6   : > { %v1389_v62 = vpop.f32.mrb[1].mxu1 }
  0xe7   : > { %v655_v63 = vpop.f32.mrb[2].mxu1 }
  0xe8   : > { %v1390_v0 = vpop.f32.mrb[3].mxu1 }
  0xed   : > { %v660_v1 = vpop.f32.mrb[4].mxu1 }
  0xee   : > { %v1393_v3 = vpop.f32.mrb[5].mxu1 }
  0xef   : > { %v663_v4 = vpop.f32.mrb[6].mxu1 }
  0xf0   : > { %v1394_v5 = vpop.f32.mrb[7].mxu1 }
  0xf5   : > { %v668_v6 = vpop.f32.mrb[8].mxu1 }
  0xf6   : > { %v1397_v7 = vpop.f32.mrb[9].mxu1 }
  0xf7   : > { %v671_v8 = vpop.f32.mrb[10].mxu1 }
  0xf8   : > { %v1398_v9 = vpop.f32.mrb[11].mxu1 }
  0xfa   : > { %v1265_v10 = vpop.f32.mrb[0].mxu0 }
  0xfb   : > { %v1266_v11 = vpop.f32.mrb[1].mxu0 }
  0xfc   : > { %v1267_v2 = vadd.f32 %v1266_v11, %v1265_v10  ;;  %v1268_v12 = vpop.f32.mrb[2].mxu0 }
  0xfd   : > { %v1269_v13 = vpop.f32.mrb[3].mxu0  ;;  %v676_v14 = vpop.f32.mrb[12].mxu1 }
  0xfe   : > { %v1750_v15 = vadd.f32 %v1267_v2, %v652_v61  ;;  %v1270_v16 = vadd.f32 %v1269_v13, %v1268_v12  ;;  %v1401_v17 = vpop.f32.mrb[13].mxu1 }
  0xff   : > { %v679_v18 = vpop.f32.mrb[14].mxu1 }
 0x100   : > { %v1752_v19 = vadd.f32 %v1270_v16, %v655_v63  ;;  %v1402_v20 = vpop.f32.mrb[15].mxu1 }
 0x102   : > { %v1271_v21 = vpop.f32.mrb[4].mxu0 }
 0x103   : > { %v1272_v22 = vpop.f32.mrb[5].mxu0 }
 0x104   : > { %v1273_v23 = vadd.f32 %v1272_v22, %v1271_v21  ;;  %v1274_v24 = vpop.f32.mrb[6].mxu0 }
 0x105   : > { %v1275_v25 = vpop.f32.mrb[7].mxu0  ;;  %v684_v26 = vpop.f32.mrb[16].mxu1 }
 0x106   : > { %v1754_v27 = vadd.f32 %v1273_v23, %v660_v1  ;;  %v1276_v28 = vadd.f32 %v1275_v25, %v1274_v24  ;;  %v1405_v29 = vpop.f32.mrb[17].mxu1 }
 0x107   : > { %v687_v30 = vpop.f32.mrb[18].mxu1 }
 0x108   : > { %v1756_v31 = vadd.f32 %v1276_v28, %v663_v4  ;;  %v1406_v32 = vpop.f32.mrb[19].mxu1 }
 0x10a   : > { %v1277_v33 = vpop.f32.mrb[8].mxu0 }
 0x10b   : > { %v1278_v34 = vpop.f32.mrb[9].mxu0 }
 0x10c   : > { %v1279_v35 = vadd.f32 %v1278_v34, %v1277_v33  ;;  %v1280_v36 = vpop.f32.mrb[10].mxu0 }
 0x10d   : > { %v1281_v37 = vpop.f32.mrb[11].mxu0  ;;  %v692_v38 = vpop.f32.mrb[20].mxu1 }
 0x10e   : > { %v1758_v39 = vadd.f32 %v1279_v35, %v668_v6  ;;  %v1282_v40 = vadd.f32 %v1281_v37, %v1280_v36  ;;  %v1409_v41 = vpop.f32.mrb[21].mxu1 }
 0x10f   : > { %v695_v42 = vpop.f32.mrb[22].mxu1 }
 0x110   : > { %v1760_v43 = vadd.f32 %v1282_v40, %v671_v8  ;;  %v1410_v44 = vpop.f32.mrb[23].mxu1 }
 0x112   : > { %v1283_v45 = vpop.f32.mrb[12].mxu0 }
 0x113   : > { %v1284_v46 = vpop.f32.mrb[13].mxu0 }
 0x114   : > { %v1285_v47 = vadd.f32 %v1284_v46, %v1283_v45  ;;  %v1286_v48 = vpop.f32.mrb[14].mxu0 }
 0x115   : > { %v1287_v49 = vpop.f32.mrb[15].mxu0  ;;  %v700_v50 = vpop.f32.mrb[24].mxu1 }
 0x116   : > { %v1762_v51 = vadd.f32 %v1285_v47, %v676_v14  ;;  %v1288_v52 = vadd.f32 %v1287_v49, %v1286_v48  ;;  %v1413_v53 = vpop.f32.mrb[25].mxu1 }
 0x117   : > { %v703_v54 = vpop.f32.mrb[26].mxu1 }
 0x118   : > { %v1764_v55 = vadd.f32 %v1288_v52, %v679_v18  ;;  %v1414_v56 = vpop.f32.mrb[27].mxu1 }
 0x11a   : > { %v1289_v57 = vpop.f32.mrb[16].mxu0 }
 0x11b   : > { %v1290_v58 = vpop.f32.mrb[17].mxu0 }
 0x11c   : > { %v1291_v59 = vadd.f32 %v1290_v58, %v1289_v57  ;;  %v1292_v60 = vpop.f32.mrb[18].mxu0 }
 0x11d   : > { %v1293_v61 = vpop.f32.mrb[19].mxu0  ;;  %v1332_v62 = vpop.f32.mrb[28].mxu1 }
 0x11e   : > { %v1766_v63 = vadd.f32 %v1291_v59, %v684_v26  ;;  %v1294_v0 = vadd.f32 %v1293_v61, %v1292_v60  ;;  %v1333_v1 = vpop.f32.mrb[29].mxu1 }
 0x11f   : > { %v1334_v3 = vadd.f32 %v1333_v1, %v1332_v62  ;;  %v1335_v4 = vpop.f32.mrb[30].mxu1 }
 0x120   : > { %v1768_v5 = vadd.f32 %v1294_v0, %v687_v30  ;;  %v1336_v6 = vpop.f32.mrb[31].mxu1 }
 0x121   : > { %v1337_v7 = vadd.f32 %v1336_v6, %v1335_v4 }
 0x122   : > { %v1295_v8 = vpop.f32.mrb[20].mxu0 }
 0x123   : > { %v1296_v9 = vpop.f32.mrb[21].mxu0 }
 0x124   : > { %v1297_v10 = vadd.f32 %v1296_v9, %v1295_v8  ;;  %v1298_v11 = vpop.f32.mrb[22].mxu0 }
 0x125   : > { %v1299_v2 = vpop.f32.mrb[23].mxu0  ;;  %v1338_v12 = vpop.f32.mrb[32].mxu1 }
 0x126   : > { %v1770_v13 = vadd.f32 %v1297_v10, %v692_v38  ;;  %v1300_v14 = vadd.f32 %v1299_v2, %v1298_v11  ;;  %v1339_v16 = vpop.f32.mrb[33].mxu1 }
 0x127   : > { %v1340_v17 = vadd.f32 %v1339_v16, %v1338_v12  ;;  %v1341_v18 = vpop.f32.mrb[34].mxu1 }
 0x128   : > { %v1772_v20 = vadd.f32 %v1300_v14, %v695_v42  ;;  %v1342_v21 = vpop.f32.mrb[35].mxu1 }
 0x129   : > { %v1343_v22 = vadd.f32 %v1342_v21, %v1341_v18 }
 0x12a   : > { %v1301_v23 = vpop.f32.mrb[24].mxu0 }
 0x12b   : > { %v1302_v24 = vpop.f32.mrb[25].mxu0 }
 0x12c   : > { %v1303_v25 = vadd.f32 %v1302_v24, %v1301_v23  ;;  %v1304_v26 = vpop.f32.mrb[26].mxu0 }
 0x12d   : > { %v1305_v28 = vpop.f32.mrb[27].mxu0  ;;  %v1344_v29 = vpop.f32.mrb[36].mxu1 }
 0x12e   : > { %v1774_v30 = vadd.f32 %v1303_v25, %v700_v50  ;;  %v1306_v32 = vadd.f32 %v1305_v28, %v1304_v26  ;;  %v1345_v33 = vpop.f32.mrb[37].mxu1 }
 0x12f   : > { %v1346_v34 = vadd.f32 %v1345_v33, %v1344_v29  ;;  %v1347_v35 = vpop.f32.mrb[38].mxu1 }
 0x130   : > { %v1776_v36 = vadd.f32 %v1306_v32, %v703_v54  ;;  %v1348_v37 = vpop.f32.mrb[39].mxu1  ;;  %v1783_v54 = vld [vmem:[%s1830_s3] ss:$0 sm:$0xff] }
 0x131   : > { %v1349_v38 = vadd.f32 %v1348_v37, %v1347_v35 }
 0x132   : > { %v984_v40 = vpop.f32.mrb[28].mxu0 }
 0x133   : > { %v985_v41 = vadd.f32 %v1334_v3, %v984_v40  ;;  %v1421_v42 = vpop.f32.mrb[29].mxu0 }
 0x134   : > { %v987_v44 = vpop.f32.mrb[30].mxu0 }
 0x135   : > { %v1039_v45 = vmax.f32 %v1750_v15, %v985_v41  ;;  %v988_v46 = vadd.f32 %v1337_v7, %v987_v44  ;;  %v1422_v47 = vpop.f32.mrb[31].mxu0  ;;  %v1350_v48 = vpop.f32.mrb[40].mxu1 }
 0x136   : > { %v1351_v49 = vpop.f32.mrb[41].mxu1 }
 0x137   : > { %v1040_v50 = vmax.f32 %v1752_v19, %v988_v46  ;;  %v1352_v52 = vadd.f32 %v1351_v49, %v1350_v48  ;;  %v1353_v53 = vpop.f32.mrb[42].mxu1 }
 0x138   : > { %v1354_v56 = vpop.f32.mrb[43].mxu1 }
 0x139   : > { %v1053_v57 = vmax.f32 %v1039_v45, %v1040_v50  ;;  %v1355_v58 = vadd.f32 %v1354_v56, %v1353_v53 }
 0x13a   : > { %v992_v59 = vpop.f32.mrb[32].mxu0 }
 0x13b   : > { %v1067_v15 = vadd.f32 %v1783_v54, %v1053_v57  ;;  %v993_v60 = vadd.f32 %v1340_v17, %v992_v59  ;;  %v1425_v61 = vpop.f32.mrb[33].mxu0 }
 0x13c   : > { %v995_v62 = vpop.f32.mrb[34].mxu0 }
 0x13d   : > { %v1074_v0 = vmax.f32 %v1067_v15, 0.0  ;;  %v1041_v19 = vmax.f32 %v1754_v27, %v993_v60  ;;  %v996_v1 = vadd.f32 %v1343_v22, %v995_v62  ;;  %v1426_v3 = vpop.f32.mrb[35].mxu0  ;;  %v1356_v4 = vpop.f32.mrb[44].mxu1 }
 0x13e   : > { %v1357_v6 = vpop.f32.mrb[45].mxu1 }
 0x13f   : > { %v1081_v7 = vpack.c.bf16 %v1074_v0, %v1074_v0  ;;  %v1042_v8 = vmax.f32 %v1756_v31, %v996_v1  ;;  %v1358_v9 = vadd.f32 %v1357_v6, %v1356_v4  ;;  %v1359_v10 = vpop.f32.mrb[46].mxu1 }
 0x140   : > { %v1360_v11 = vpop.f32.mrb[47].mxu1 }
 0x141   : > { %1089 = vst.msk [vmem:[%s1791_s17] sm:$0xf] %vm1088_vm2, %v1081_v7  ;;  %v1054_v27 = vmax.f32 %v1041_v19, %v1042_v8  ;;  %v1361_v2 = vadd.f32 %v1360_v11, %v1359_v10 }
 0x142   : > { %v1000_v12 = vpop.f32.mrb[36].mxu0 }
 0x143   : > { %v1068_v14 = vadd.f32 %v1783_v54, %v1054_v27  ;;  %v1001_v16 = vadd.f32 %v1346_v34, %v1000_v12  ;;  %v1429_v17 = vpop.f32.mrb[37].mxu0 }
 0x144   : > { %v1003_v18 = vpop.f32.mrb[38].mxu0 }
 0x145   : > { %v1075_v21 = vmax.f32 %v1068_v14, 0.0  ;;  %v1043_v22 = vmax.f32 %v1758_v39, %v1001_v16  ;;  %v1004_v23 = vadd.f32 %v1349_v38, %v1003_v18  ;;  %v1430_v24 = vpop.f32.mrb[39].mxu0  ;;  %v1362_v31 = vpop.f32.mrb[48].mxu1 }
 0x146   : > { %v1363_v25 = vpop.f32.mrb[49].mxu1 }
 0x147   : > { %v1082_v26 = vpack.c.bf16 %v1075_v21, %v1075_v21  ;;  %v1044_v28 = vmax.f32 %v1760_v43, %v1004_v23  ;;  %v1364_v29 = vadd.f32 %v1363_v25, %v1362_v31  ;;  %v1365_v32 = vpop.f32.mrb[50].mxu1 }
 0x148   : > { %v1366_v33 = vpop.f32.mrb[51].mxu1 }
 0x149   : > { %1090 = vst.msk [vmem:[%s1791_s17 + $0x4] sm:$0xf] %vm1088_vm2, %v1082_v26  ;;  %v1055_v35 = vmax.f32 %v1043_v22, %v1044_v28  ;;  %v1367_v37 = vadd.f32 %v1366_v33, %v1365_v32 }
 0x14a   : > { %v1008_v34 = vpop.f32.mrb[40].mxu0 }
 0x14b   : > { %v1069_v40 = vadd.f32 %v1783_v54, %v1055_v35  ;;  %v1009_v41 = vadd.f32 %v1352_v52, %v1008_v34  ;;  %v1433_v39 = vpop.f32.mrb[41].mxu0 }
 0x14c   : > { %v1011_v38 = vpop.f32.mrb[42].mxu0 }
 0x14d   : > { %v1076_v42 = vmax.f32 %v1069_v40, 0.0  ;;  %v1045_v44 = vmax.f32 %v1762_v51, %v1009_v41  ;;  %v1012_v45 = vadd.f32 %v1355_v58, %v1011_v38  ;;  %v1434_v46 = vpop.f32.mrb[43].mxu0  ;;  %v1368_v43 = vpop.f32.mrb[52].mxu1 }
 0x14e   : > { %v1369_v47 = vpop.f32.mrb[53].mxu1 }
 0x14f   : > { %v1083_v48 = vpack.c.bf16 %v1076_v42, %v1076_v42  ;;  %v1046_v49 = vmax.f32 %v1764_v55, %v1012_v45  ;;  %v1370_v50 = vadd.f32 %v1369_v47, %v1368_v43  ;;  %v1371_v53 = vpop.f32.mrb[54].mxu1 }
 0x150   : > { %v1372_v56 = vpop.f32.mrb[55].mxu1 }
 0x151   : > { %1091 = vst.msk [vmem:[%s1791_s17 + $0x8] sm:$0xf] %vm1088_vm2, %v1083_v48  ;;  %v1056_v57 = vmax.f32 %v1045_v44, %v1046_v49  ;;  %v1373_v59 = vadd.f32 %v1372_v56, %v1371_v53 }
 0x152   : > { %v1016_v52 = vpop.f32.mrb[44].mxu0 }
 0x153   : > { %v1070_v15 = vadd.f32 %v1783_v54, %v1056_v57  ;;  %v1017_v60 = vadd.f32 %v1358_v9, %v1016_v52  ;;  %v1437_v51 = vpop.f32.mrb[45].mxu0 }
 0x154   : > { %v1019_v58 = vpop.f32.mrb[46].mxu0 }
 0x155   : > { %v1077_v61 = vmax.f32 %v1070_v15, 0.0  ;;  %v1047_v62 = vmax.f32 %v1766_v63, %v1017_v60  ;;  %v1032_v0 = vpop.f32.mrb[56].mxu1  ;;  %v1020_v19 = vadd.f32 %v1361_v2, %v1019_v58  ;;  %v1438_v55 = vpop.f32.mrb[47].mxu0 }
 0x156   : > { %v1033_v1 = vadd.f32 %v1370_v50, %v1032_v0  ;;  %v1445_v3 = vpop.f32.mrb[57].mxu1 }
 0x157   : > { %v1084_v4 = vpack.c.bf16 %v1077_v61, %v1077_v61  ;;  %v1048_v6 = vmax.f32 %v1768_v5, %v1020_v19  ;;  %v1035_v7 = vpop.f32.mrb[58].mxu1 }
 0x158   : > { %v1051_v8 = vmax.f32 %v1774_v30, %v1033_v1  ;;  %v1036_v10 = vadd.f32 %v1373_v59, %v1035_v7  ;;  %v1446_v11 = vpop.f32.mrb[59].mxu1 }
 0x159   : > { %1092 = vst.msk [vmem:[%s1791_s17 + $0xc] sm:$0xf] %vm1088_vm2, %v1084_v4  ;;  %v1057_v9 = vmax.f32 %v1047_v62, %v1048_v6 }
 0x15a   : > { %v1052_v27 = vmax.f32 %v1776_v36, %v1036_v10  ;;  %v1024_v63 = vpop.f32.mrb[48].mxu0 }
 0x15b   : > { %v1071_v2 = vadd.f32 %v1783_v54, %v1057_v9  ;;  %v1025_v12 = vadd.f32 %v1364_v29, %v1024_v63  ;;  %v1441_v14 = vpop.f32.mrb[49].mxu0 }
 0x15c   : > { %v1059_v16 = vmax.f32 %v1051_v8, %v1052_v27  ;;  %v1027_v17 = vpop.f32.mrb[50].mxu0 }
 0x15d   : > { %v1078_v5 = vmax.f32 %v1071_v2, 0.0  ;;  %v1049_v30 = vmax.f32 %v1770_v13, %v1025_v12  ;;  %v1028_v18 = vadd.f32 %v1367_v37, %v1027_v17  ;;  %v1442_v21 = vpop.f32.mrb[51].mxu0 }
 0x15e   : > { %v1073_v22 = vadd.f32 %v1783_v54, %v1059_v16 }
 0x15f   : > { %v1085_v23 = vpack.c.bf16 %v1078_v5, %v1078_v5  ;;  %v1050_v24 = vmax.f32 %v1772_v20, %v1028_v18 }
 0x160   : > { %v1080_v36 = vmax.f32 %v1073_v22, 0.0 }
 0x161   : > { %1093 = vst.msk [vmem:[%s1791_s17 + $0x10] sm:$0xf] %vm1088_vm2, %v1085_v23  ;;  %v1058_v31 = vmax.f32 %v1049_v30, %v1050_v24 }
 0x162   : > { %v1087_v25 = vpack.c.bf16 %v1080_v36, %v1080_v36 }
 0x163   : > { %v1072_v26 = vadd.f32 %v1783_v54, %v1058_v31 }
 0x164   : > { %1095 = vst.msk [vmem:[%s1791_s17 + $0x18] sm:$0xf] %vm1088_vm2, %v1087_v25 }
 0x165   : > { %v1079_v28 = vmax.f32 %v1072_v26, 0.0 }
 0x167   : > { %v1086_v29 = vpack.c.bf16 %v1079_v28, %v1079_v28 }
 0x169   : > { %1094 = vst.msk [vmem:[%s1791_s17 + $0x14] sm:$0xf] %vm1088_vm2, %v1086_v29 }
 0x16a PF: > { %s14_s15 = sadd.s32 1, %s1542_s15  }
 0x16b   : > { %p11_p4 = scmp.ge.s32.totalorder %s14_s15, 4  }
 0x16d   :  { %13 = sbr.rel (!%p11_p4) target bundleno = 1 (0x1), region = 69 }

// kernel: mnist_net_forward.5
= control target key start
LH: loop header
LB: loop body
LE: loop exit
PB: predicated region body
PF: predicated region fallthrough
CT: control target
= control target key end

     0   :  { %vm3112_vm0 = vmmov 0   ;;  %vm1696_vm1 = vcmask 523264   ;;  %s3817_s1 = inlined_call_operand.vmem [shape: bf16[3136,128], index: 1, kind: input, shape index: {}]   ;;  %s3818_s0 = inlined_call_operand.vmem [shape: bf16[8,3136], index: 0, kind: input, shape index: {}]   ;;  %s3819_s2 = inlined_call_operand.vmem [shape: f32[1,128], index: 2, kind: input, shape index: {}]   ;;  %s3820_s3 = inlined_call_operand.vmem [shape: bf16[128,128], index: 3, kind: input, shape index: {}]   ;;  %s3821_s4 = inlined_call_operand.vmem [shape: f32[1,128], index: 4, kind: input, shape index: {}]   ;;  %s3822_s5 = inlined_call_operand.vmem [shape: f32[8,128], index: 5, kind: output, shape index: {}]  }
   0x1   :  { %v2882_v0 = vld [vmem:[%s3817_s1 + $0x40] sm:$0xff]   ;;  %v2886_v4 = vld [vmem:[%s3817_s1 + $0x48] sm:$0xff]   ;;  %v2890_v8 = vld [vmem:[%s3817_s1 + $0x50] sm:$0xff]  }
   0x2   :  { %v2883_v1 = vld [vmem:[%s3817_s1] sm:$0xff]   ;;  %2570 = vmatprep.subr.bf16.mxu0 %v2882_v0  ;;  %v2887_v5 = vld [vmem:[%s3817_s1 + $0x8] sm:$0xff]   ;;  %v2891_v9 = vld [vmem:[%s3817_s1 + $0x10] sm:$0xff]  }
   0x3   :  { %v2884_v2 = vld [vmem:[%s3817_s1 + $0xc0] sm:$0xff]   ;;  %2571 = vmatpush3.bf16.msra.mxu0 %v2883_v1  ;;  %v2888_v6 = vld [vmem:[%s3817_s1 + $0xc8] sm:$0xff]   ;;  %v2892_v10 = vld [vmem:[%s3817_s1 + $0xd0] sm:$0xff]  }
   0x4   :  { %v2885_v3 = vld [vmem:[%s3817_s1 + $0x80] sm:$0xff]   ;;  %2592 = vmatprep.subr.bf16.mxu1 %v2884_v2  ;;  %2572 = vmatprep.subr.bf16.mxu0 %v2886_v4  ;;  %v2889_v7 = vld [vmem:[%s3817_s1 + $0x88] sm:$0xff]   ;;  %v2893_v11 = vld [vmem:[%s3817_s1 + $0x90] sm:$0xff]  }
   0x5   :  { %2593 = vmatpush3.bf16.msra.mxu1 %v2885_v3  ;;  %v2894_v12 = vld [vmem:[%s3817_s1 + $0x58] sm:$0xff]   ;;  %v2898_v16 = vld [vmem:[%s3817_s1 + $0x60] sm:$0xff]   ;;  %v2902_v20 = vld [vmem:[%s3817_s1 + $0x68] sm:$0xff]  }
   0x6   :  { %2594 = vmatprep.subr.bf16.mxu1 %v2888_v6  ;;  %v2895_v13 = vld [vmem:[%s3817_s1 + $0x18] sm:$0xff]   ;;  %v2899_v17 = vld [vmem:[%s3817_s1 + $0x20] sm:$0xff]   ;;  %v2903_v21 = vld [vmem:[%s3817_s1 + $0x28] sm:$0xff]  }
   0x7   :  { %2573 = vmatpush3.bf16.msra.mxu0 %v2887_v5  ;;  %v2896_v14 = vld [vmem:[%s3817_s1 + $0xd8] sm:$0xff]   ;;  %v2900_v18 = vld [vmem:[%s3817_s1 + $0xe0] sm:$0xff]   ;;  %v2904_v22 = vld [vmem:[%s3817_s1 + $0xe8] sm:$0xff]  }
   0x8   :  { %2574 = vmatprep.subr.bf16.mxu0 %v2890_v8  ;;  %v2897_v15 = vld [vmem:[%s3817_s1 + $0x98] sm:$0xff]   ;;  %v2901_v19 = vld [vmem:[%s3817_s1 + $0xa0] sm:$0xff]   ;;  %v2905_v23 = vld [vmem:[%s3817_s1 + $0xa8] sm:$0xff]  }
   0x9   :  { %2595 = vmatpush3.bf16.msra.mxu1 %v2889_v7  ;;  %v2906_v24 = vld [vmem:[%s3817_s1 + $0x70] sm:$0xff]   ;;  %v2910_v28 = vld [vmem:[%s3817_s1 + $0x78] sm:$0xff]   ;;  %v21_v31 = vld [vmem:[%s3818_s0] sm:$0xff] }
   0xa   :  { %2596 = vmatprep.subr.bf16.mxu1 %v2892_v10  ;;  %v2907_v25 = vld [vmem:[%s3817_s1 + $0x30] sm:$0xff]   ;;  %v2911_v29 = vld [vmem:[%s3817_s1 + $0x38] sm:$0xff]   ;;  %v2339_v32 = vcombine.low %v21_v31, %v21_v31  ;;  %v2340_v33 = vcombine.high %v21_v31, %v21_v31  ;;  %v2916_v35 = vld [vmem:[%s3817_s1 + $0x140] sm:$0xff]  }
   0xb   :  { %2575 = vmatpush3.bf16.msra.mxu0 %v2891_v9  ;;  %v2908_v26 = vld [vmem:[%s3817_s1 + $0xf0] sm:$0xff]   ;;  %v2912_v30 = vld [vmem:[%s3817_s1 + $0xf8] sm:$0xff]   ;;  %v22_v36 = vld [vmem:[%s3818_s0 + $0x8] sm:$0xff] }
   0xc   :  { %2576 = vmatprep.subr.bf16.mxu0 %v2894_v12  ;;  %v2909_v27 = vld [vmem:[%s3817_s1 + $0xb0] sm:$0xff]   ;;  %v2915_v34 = vld [vmem:[%s3817_s1 + $0xb8] sm:$0xff]   ;;  %1732 = vmatprep.mubr.bf16.mxu0 %v2340_v33  ;;  %v2341_v37 = vcombine.low %v22_v36, %v22_v36  ;;  %v2342_v38 = vcombine.high %v22_v36, %v22_v36  ;;  %v2919_v39 = vld [vmem:[%s3817_s1 + $0x100] sm:$0xff]  }
   0xd   :  { %2597 = vmatpush3.bf16.msra.mxu1 %v2893_v11  ;;  %v2920_v40 = vld [vmem:[%s3817_s1 + $0x1c0] sm:$0xff]   ;;  %v2922_v42 = vld [vmem:[%s3817_s1 + $0x148] sm:$0xff]   ;;  %v2926_v46 = vld [vmem:[%s3817_s1 + $0x150] sm:$0xff]  }
   0xe   :  { %2598 = vmatprep.subr.bf16.mxu1 %v2896_v14  ;;  %1772 = vmatprep.mubr.bf16.mxu1 %v2342_v38  ;;  %v2921_v41 = vld [vmem:[%s3817_s1 + $0x180] sm:$0xff]   ;;  %v2923_v43 = vld [vmem:[%s3817_s1 + $0x108] sm:$0xff]   ;;  %v2927_v47 = vld [vmem:[%s3817_s1 + $0x110] sm:$0xff]  }
   0xf   :  { %2577 = vmatpush3.bf16.msra.mxu0 %v2895_v13  ;;  %v2924_v44 = vld [vmem:[%s3817_s1 + $0x1c8] sm:$0xff]   ;;  %v2928_v48 = vld [vmem:[%s3817_s1 + $0x1d0] sm:$0xff]   ;;  %v2930_v50 = vld [vmem:[%s3817_s1 + $0x158] sm:$0xff]  }
  0x10   :  { %2578 = vmatprep.subr.bf16.mxu0 %v2898_v16  ;;  %v2925_v45 = vld [vmem:[%s3817_s1 + $0x188] sm:$0xff]   ;;  %v2929_v49 = vld [vmem:[%s3817_s1 + $0x190] sm:$0xff]   ;;  %v2931_v51 = vld [vmem:[%s3817_s1 + $0x118] sm:$0xff]  }
  0x11   :  { %2599 = vmatpush3.bf16.msra.mxu1 %v2897_v15  ;;  %v2932_v52 = vld [vmem:[%s3817_s1 + $0x1d8] sm:$0xff]   ;;  %v2934_v54 = vld [vmem:[%s3817_s1 + $0x160] sm:$0xff]   ;;  %v2938_v58 = vld [vmem:[%s3817_s1 + $0x168] sm:$0xff]  }
  0x12   :  { %2600 = vmatprep.subr.bf16.mxu1 %v2900_v18  ;;  %v2933_v53 = vld [vmem:[%s3817_s1 + $0x198] sm:$0xff]   ;;  %v2935_v55 = vld [vmem:[%s3817_s1 + $0x120] sm:$0xff]   ;;  %v2939_v59 = vld [vmem:[%s3817_s1 + $0x128] sm:$0xff]  }
  0x13   :  { %2579 = vmatpush3.bf16.msra.mxu0 %v2899_v17  ;;  %v2936_v56 = vld [vmem:[%s3817_s1 + $0x1e0] sm:$0xff]   ;;  %v2940_v60 = vld [vmem:[%s3817_s1 + $0x1e8] sm:$0xff]   ;;  %v2942_v62 = vld [vmem:[%s3817_s1 + $0x170] sm:$0xff]  }
  0x14   :  { %2580 = vmatprep.subr.bf16.mxu0 %v2902_v20  ;;  %v2937_v57 = vld [vmem:[%s3817_s1 + $0x1a0] sm:$0xff]   ;;  %v2941_v61 = vld [vmem:[%s3817_s1 + $0x1a8] sm:$0xff]   ;;  %v2943_v63 = vld [vmem:[%s3817_s1 + $0x130] sm:$0xff]  }
  0x15   :  { %2601 = vmatpush3.bf16.msra.mxu1 %v2901_v19  ;;  %v2944_v0 = vld [vmem:[%s3817_s1 + $0x1f0] sm:$0xff]   ;;  %v2946_v2 = vld [vmem:[%s3817_s1 + $0x178] sm:$0xff]   ;;  %v2952_v9 = vld [vmem:[%s3817_s1 + $0x240] sm:$0xff]  }
  0x16   :  { %2602 = vmatprep.subr.bf16.mxu1 %v2904_v22  ;;  %v2945_v1 = vld [vmem:[%s3817_s1 + $0x1b0] sm:$0xff]   ;;  %v2947_v3 = vld [vmem:[%s3817_s1 + $0x138] sm:$0xff]   ;;  %v2955_v13 = vld [vmem:[%s3817_s1 + $0x200] sm:$0xff]  }
  0x17   :  { %2581 = vmatpush3.bf16.msra.mxu0 %v2903_v21  ;;  %v2948_v4 = vld [vmem:[%s3817_s1 + $0x1f8] sm:$0xff]   ;;  %v23_v5 = vld [vmem:[%s3818_s0 + $0x10] sm:$0xff]  ;;  %v2956_v14 = vld [vmem:[%s3817_s1 + $0x2c0] sm:$0xff]  }
  0x18   :  { %2582 = vmatprep.subr.bf16.mxu0 %v2906_v24  ;;  %v2343_v6 = vcombine.low %v23_v5, %v23_v5  ;;  %v2344_v7 = vcombine.high %v23_v5, %v23_v5  ;;  %v2951_v8 = vld [vmem:[%s3817_s1 + $0x1b8] sm:$0xff]   ;;  %v2957_v15 = vld [vmem:[%s3817_s1 + $0x280] sm:$0xff]   ;;  %v2958_v16 = vld [vmem:[%s3817_s1 + $0x248] sm:$0xff]  }
  0x19   :  { %2603 = vmatpush3.bf16.msra.mxu1 %v2905_v23  ;;  %v24_v10 = vld [vmem:[%s3818_s0 + $0x18] sm:$0xff]  ;;  %v2959_v17 = vld [vmem:[%s3817_s1 + $0x208] sm:$0xff]   ;;  %v2962_v20 = vld [vmem:[%s3817_s1 + $0x250] sm:$0xff]  }
  0x1a   :  { %2604 = vmatprep.subr.bf16.mxu1 %v2908_v26  ;;  %v2345_v11 = vcombine.low %v24_v10, %v24_v10  ;;  %v2346_v12 = vcombine.high %v24_v10, %v24_v10  ;;  %v2960_v18 = vld [vmem:[%s3817_s1 + $0x2c8] sm:$0xff]   ;;  %v2963_v21 = vld [vmem:[%s3817_s1 + $0x210] sm:$0xff]   ;;  %v2966_v24 = vld [vmem:[%s3817_s1 + $0x258] sm:$0xff]  }
  0x1b   :  { %2583 = vmatpush3.bf16.msra.mxu0 %v2907_v25  ;;  %v2961_v19 = vld [vmem:[%s3817_s1 + $0x288] sm:$0xff]   ;;  %v2964_v22 = vld [vmem:[%s3817_s1 + $0x2d0] sm:$0xff]   ;;  %v2967_v25 = vld [vmem:[%s3817_s1 + $0x218] sm:$0xff]  }
  0x1c   :  { %2584 = vmatprep.subr.bf16.mxu0 %v2910_v28  ;;  %v2965_v23 = vld [vmem:[%s3817_s1 + $0x290] sm:$0xff]   ;;  %v2968_v26 = vld [vmem:[%s3817_s1 + $0x2d8] sm:$0xff]   ;;  %v2970_v28 = vld [vmem:[%s3817_s1 + $0x260] sm:$0xff]  }
  0x1d   :  { %2605 = vmatpush3.bf16.msra.mxu1 %v2909_v27  ;;  %v2969_v27 = vld [vmem:[%s3817_s1 + $0x298] sm:$0xff]   ;;  %v2973_v31 = vld [vmem:[%s3817_s1 + $0x2a0] sm:$0xff]   ;;  %v2975_v33 = vld [vmem:[%s3817_s1 + $0x228] sm:$0xff]  }
  0x1e   :  { %2606 = vmatprep.subr.bf16.mxu1 %v2912_v30  ;;  %v2972_v30 = vld [vmem:[%s3817_s1 + $0x2e0] sm:$0xff]   ;;  %v2978_v36 = vld [vmem:[%s3817_s1 + $0x270] sm:$0xff]  }
  0x1f   :  { %2585 = vmatpush3.bf16.msra.mxu0 %v2911_v29  ;;  %v2971_v29 = vld [vmem:[%s3817_s1 + $0x220] sm:$0xff]   ;;  %v2980_v38 = vld [vmem:[%s3817_s1 + $0x2f0] sm:$0xff]  }
  0x20   :  { %2614 = vmatprep.subr.bf16.mxu0 %v2916_v35  ;;  %v2977_v35 = vld [vmem:[%s3817_s1 + $0x2a8] sm:$0xff]   ;;  %v3009_v5 = vld [vmem:[%s3817_s1 + $0x3a0] sm:$0xff]   ;;  %v3014_v10 = vld [vmem:[%s3817_s1 + $0x370] sm:$0xff]  }
  0x21   :  { %2607 = vmatpush3.bf16.msra.mxu1 %v2915_v34  ;;  %v2976_v34 = vld [vmem:[%s3817_s1 + $0x2e8] sm:$0xff]  }
  0x22   :  { %1733 = vmatmul.mubr.bf16.vlgmr.msra.gmra.mrb[0].mxu0 %v2339_v32  ;;  %2636 = vmatprep.subr.bf16.mxu1 %v2920_v40  ;;  %v2974_v32 = vld [vmem:[%s3817_s1 + $0x268] sm:$0xff]   ;;  %v2982_v40 = vld [vmem:[%s3817_s1 + $0x278] sm:$0xff]  }
  0x23   :  { %2615 = vmatpush3.bf16.msra.mxu0 %v2919_v39  ;;  %1812 = vmatprep.mubr.bf16.mxu0 %v2344_v7  ;;  %v2981_v39 = vld [vmem:[%s3817_s1 + $0x2b0] sm:$0xff]   ;;  %v3011_v7 = vld [vmem:[%s3817_s1 + $0x328] sm:$0xff]  }
  0x24   :  { %1773 = vmatmul.mubr.bf16.vlgmr.msra.gmra.mrb[0].mxu1 %v2341_v37  ;;  %2616 = vmatprep.subr.bf16.mxu0 %v2922_v42  ;;  %v2979_v37 = vld [vmem:[%s3817_s1 + $0x230] sm:$0xff]   ;;  %v2984_v42 = vld [vmem:[%s3817_s1 + $0x2f8] sm:$0xff]  }
  0x25   :  { %2637 = vmatpush3.bf16.msra.mxu1 %v2921_v41  ;;  %1852 = vmatprep.mubr.bf16.mxu1 %v2346_v12  ;;  %v2983_v41 = vld [vmem:[%s3817_s1 + $0x238] sm:$0xff]   ;;  %v3016_v12 = vld [vmem:[%s3817_s1 + $0x3f0] sm:$0xff]  }
  0x26   :  { %2638 = vmatprep.subr.bf16.mxu1 %v2924_v44 }
  0x27   :  { %2617 = vmatpush3.bf16.msra.mxu0 %v2923_v43  ;;  %v25_v43 = vld [vmem:[%s3818_s0 + $0x20] sm:$0xff] }
  0x28   :  { %2618 = vmatprep.subr.bf16.mxu0 %v2926_v46  ;;  %v2347_v44 = vcombine.low %v25_v43, %v25_v43  ;;  %v2987_v46 = vld [vmem:[%s3817_s1 + $0x2b8] sm:$0xff]  }
  0x29   :  { %2639 = vmatpush3.bf16.msra.mxu1 %v2925_v45  ;;  %v2348_v45 = vcombine.high %v25_v43, %v25_v43  ;;  %v3045_v43 = vld [vmem:[%s3817_s1 + $0x4a0] sm:$0xff]  }
  0x2a   :  { %2640 = vmatprep.subr.bf16.mxu1 %v2928_v48  ;;  %v26_v48 = vld [vmem:[%s3818_s0 + $0x28] sm:$0xff] }
  0x2b   :  { %2619 = vmatpush3.bf16.msra.mxu0 %v2927_v47  ;;  %v2988_v47 = vld [vmem:[%s3817_s1 + $0x340] sm:$0xff]  }
  0x2c   :  { %2620 = vmatprep.subr.bf16.mxu0 %v2930_v50  ;;  %v2350_v50 = vcombine.high %v26_v48, %v26_v48 }
  0x2d   :  { %2641 = vmatpush3.bf16.msra.mxu1 %v2929_v49  ;;  %v2349_v49 = vcombine.low %v26_v48, %v26_v48  ;;  %v3050_v48 = vld [vmem:[%s3817_s1 + $0x470] sm:$0xff]  }
  0x2e   :  { %2642 = vmatprep.subr.bf16.mxu1 %v2932_v52  ;;  %v2992_v52 = vld [vmem:[%s3817_s1 + $0x3c0] sm:$0xff]  }
  0x2f   :  { %2621 = vmatpush3.bf16.msra.mxu0 %v2931_v51  ;;  %v2991_v51 = vld [vmem:[%s3817_s1 + $0x300] sm:$0xff]  }
  0x30   :  { %2622 = vmatprep.subr.bf16.mxu0 %v2934_v54  ;;  %v2994_v54 = vld [vmem:[%s3817_s1 + $0x348] sm:$0xff]  }
  0x31   :  { %2643 = vmatpush3.bf16.msra.mxu1 %v2933_v53  ;;  %v2993_v53 = vld [vmem:[%s3817_s1 + $0x380] sm:$0xff]  }
  0x32   :  { %2644 = vmatprep.subr.bf16.mxu1 %v2936_v56  ;;  %v2996_v56 = vld [vmem:[%s3817_s1 + $0x3c8] sm:$0xff]  }
  0x33   :  { %2623 = vmatpush3.bf16.msra.mxu0 %v2935_v55  ;;  %v2995_v55 = vld [vmem:[%s3817_s1 + $0x308] sm:$0xff]  }
  0x34   :  { %2624 = vmatprep.subr.bf16.mxu0 %v2938_v58  ;;  %v2998_v58 = vld [vmem:[%s3817_s1 + $0x350] sm:$0xff]  }
  0x35   :  { %2645 = vmatpush3.bf16.msra.mxu1 %v2937_v57  ;;  %v2997_v57 = vld [vmem:[%s3817_s1 + $0x388] sm:$0xff]  }
  0x36   :  { %2646 = vmatprep.subr.bf16.mxu1 %v2940_v60  ;;  %v3000_v60 = vld [vmem:[%s3817_s1 + $0x3d0] sm:$0xff]  }
  0x37   :  { %2625 = vmatpush3.bf16.msra.mxu0 %v2939_v59  ;;  %v2999_v59 = vld [vmem:[%s3817_s1 + $0x310] sm:$0xff]  }
  0x38   :  { %2626 = vmatprep.subr.bf16.mxu0 %v2942_v62  ;;  %v3002_v62 = vld [vmem:[%s3817_s1 + $0x358] sm:$0xff]  }
  0x39   :  { %2647 = vmatpush3.bf16.msra.mxu1 %v2941_v61  ;;  %v3001_v61 = vld [vmem:[%s3817_s1 + $0x390] sm:$0xff]  }
  0x3a   :  { %2648 = vmatprep.subr.bf16.mxu1 %v2944_v0  ;;  %v3004_v0 = vld [vmem:[%s3817_s1 + $0x3d8] sm:$0xff]  }
  0x3b   :  { %2627 = vmatpush3.bf16.msra.mxu0 %v2943_v63  ;;  %v3003_v63 = vld [vmem:[%s3817_s1 + $0x318] sm:$0xff]  }
  0x3c   :  { %2628 = vmatprep.subr.bf16.mxu0 %v2946_v2  ;;  %v3006_v2 = vld [vmem:[%s3817_s1 + $0x360] sm:$0xff]  }
  0x3d   :  { %2649 = vmatpush3.bf16.msra.mxu1 %v2945_v1  ;;  %v3005_v1 = vld [vmem:[%s3817_s1 + $0x398] sm:$0xff]  }
  0x3e   :  { %2650 = vmatprep.subr.bf16.mxu1 %v2948_v4  ;;  %v3008_v4 = vld [vmem:[%s3817_s1 + $0x3e0] sm:$0xff]  }
  0x3f   :  { %2629 = vmatpush3.bf16.msra.mxu0 %v2947_v3  ;;  %v3007_v3 = vld [vmem:[%s3817_s1 + $0x320] sm:$0xff]  }
  0x40   :  { %2658 = vmatprep.subr.bf16.mxu0 %v2952_v9  ;;  %v3013_v9 = vld [vmem:[%s3817_s1 + $0x3a8] sm:$0xff]  }
  0x41   :  { %2651 = vmatpush3.bf16.msra.mxu1 %v2951_v8  ;;  %v3012_v8 = vld [vmem:[%s3817_s1 + $0x3e8] sm:$0xff]  }
  0x42   :  { %1813 = vmatmul.mubr.bf16.vlgmr.msra.gmra.mrb[4].mxu0 %v2343_v6  ;;  %2680 = vmatprep.subr.bf16.mxu1 %v2956_v14  ;;  %v3010_v6 = vld [vmem:[%s3817_s1 + $0x368] sm:$0xff]   ;;  %v3018_v14 = vld [vmem:[%s3817_s1 + $0x378] sm:$0xff]  }
  0x43   :  { %2659 = vmatpush3.bf16.msra.mxu0 %v2955_v13  ;;  %1892 = vmatprep.mubr.bf16.mxu0 %v2348_v45  ;;  %v3017_v13 = vld [vmem:[%s3817_s1 + $0x3b0] sm:$0xff]   ;;  %v3047_v45 = vld [vmem:[%s3817_s1 + $0x428] sm:$0xff]  }
  0x44   :  { %1853 = vmatmul.mubr.bf16.vlgmr.msra.gmra.mrb[4].mxu1 %v2345_v11  ;;  %2660 = vmatprep.subr.bf16.mxu0 %v2958_v16  ;;  %v3015_v11 = vld [vmem:[%s3817_s1 + $0x330] sm:$0xff]   ;;  %v3020_v16 = vld [vmem:[%s3817_s1 + $0x3f8] sm:$0xff]  }
  0x45   :  { %2681 = vmatpush3.bf16.msra.mxu1 %v2957_v15  ;;  %1932 = vmatprep.mubr.bf16.mxu1 %v2350_v50  ;;  %v3019_v15 = vld [vmem:[%s3817_s1 + $0x338] sm:$0xff]   ;;  %v3052_v50 = vld [vmem:[%s3817_s1 + $0x4f0] sm:$0xff]  }
  0x46   :  { %2682 = vmatprep.subr.bf16.mxu1 %v2960_v18 }
  0x47   :  { %2661 = vmatpush3.bf16.msra.mxu0 %v2959_v17  ;;  %v27_v17 = vld [vmem:[%s3818_s0 + $0x30] sm:$0xff] }
  0x48   :  { %2662 = vmatprep.subr.bf16.mxu0 %v2962_v20  ;;  %v2351_v18 = vcombine.low %v27_v17, %v27_v17  ;;  %v3023_v20 = vld [vmem:[%s3817_s1 + $0x3b8] sm:$0xff]  }
  0x49   :  { %2683 = vmatpush3.bf16.msra.mxu1 %v2961_v19  ;;  %v2352_v19 = vcombine.high %v27_v17, %v27_v17  ;;  %v3081_v17 = vld [vmem:[%s3817_s1 + $0x5a0] sm:$0xff]  }
  0x4a   :  { %2684 = vmatprep.subr.bf16.mxu1 %v2964_v22  ;;  %v28_v22 = vld [vmem:[%s3818_s0 + $0x38] sm:$0xff] }
  0x4b   :  { %2663 = vmatpush3.bf16.msra.mxu0 %v2963_v21  ;;  %v3024_v21 = vld [vmem:[%s3817_s1 + $0x440] sm:$0xff]  }
  0x4c   :  { %2664 = vmatprep.subr.bf16.mxu0 %v2966_v24  ;;  %v2354_v24 = vcombine.high %v28_v22, %v28_v22 }
  0x4d   :  { %2685 = vmatpush3.bf16.msra.mxu1 %v2965_v23  ;;  %v2353_v23 = vcombine.low %v28_v22, %v28_v22  ;;  %v3086_v22 = vld [vmem:[%s3817_s1 + $0x570] sm:$0xff]  }
  0x4e   :  { %2686 = vmatprep.subr.bf16.mxu1 %v2968_v26  ;;  %v3028_v26 = vld [vmem:[%s3817_s1 + $0x4c0] sm:$0xff]  }
  0x4f   :  { %2665 = vmatpush3.bf16.msra.mxu0 %v2967_v25  ;;  %v3027_v25 = vld [vmem:[%s3817_s1 + $0x400] sm:$0xff]  }
  0x50   :  { %2666 = vmatprep.subr.bf16.mxu0 %v2970_v28  ;;  %v3030_v28 = vld [vmem:[%s3817_s1 + $0x448] sm:$0xff]  }
  0x51   :  { %2687 = vmatpush3.bf16.msra.mxu1 %v2969_v27  ;;  %v3029_v27 = vld [vmem:[%s3817_s1 + $0x480] sm:$0xff]  }
  0x52   :  { %2688 = vmatprep.subr.bf16.mxu1 %v2972_v30  ;;  %v3032_v30 = vld [vmem:[%s3817_s1 + $0x4c8] sm:$0xff]  }
  0x53   :  { %2667 = vmatpush3.bf16.msra.mxu0 %v2971_v29  ;;  %v3031_v29 = vld [vmem:[%s3817_s1 + $0x408] sm:$0xff]  }
  0x54   :  { %2668 = vmatprep.subr.bf16.mxu0 %v2974_v32  ;;  %v3034_v32 = vld [vmem:[%s3817_s1 + $0x450] sm:$0xff]  }
  0x55   :  { %2689 = vmatpush3.bf16.msra.mxu1 %v2973_v31  ;;  %v3033_v31 = vld [vmem:[%s3817_s1 + $0x488] sm:$0xff]  }
  0x56   :  { %2690 = vmatprep.subr.bf16.mxu1 %v2976_v34  ;;  %v3036_v34 = vld [vmem:[%s3817_s1 + $0x4d0] sm:$0xff]  }
  0x57   :  { %2669 = vmatpush3.bf16.msra.mxu0 %v2975_v33  ;;  %v3035_v33 = vld [vmem:[%s3817_s1 + $0x410] sm:$0xff]  }
  0x58   :  { %2670 = vmatprep.subr.bf16.mxu0 %v2978_v36  ;;  %v3038_v36 = vld [vmem:[%s3817_s1 + $0x458] sm:$0xff]  }
  0x59   :  { %2691 = vmatpush3.bf16.msra.mxu1 %v2977_v35  ;;  %v3037_v35 = vld [vmem:[%s3817_s1 + $0x490] sm:$0xff]  }
  0x5a   :  { %2692 = vmatprep.subr.bf16.mxu1 %v2980_v38  ;;  %v3040_v38 = vld [vmem:[%s3817_s1 + $0x4d8] sm:$0xff]  }
  0x5b   :  { %2671 = vmatpush3.bf16.msra.mxu0 %v2979_v37  ;;  %v3039_v37 = vld [vmem:[%s3817_s1 + $0x418] sm:$0xff]  }
  0x5c   :  { %2672 = vmatprep.subr.bf16.mxu0 %v2982_v40  ;;  %v3042_v40 = vld [vmem:[%s3817_s1 + $0x460] sm:$0xff]  }
  0x5d   :  { %2693 = vmatpush3.bf16.msra.mxu1 %v2981_v39  ;;  %v3041_v39 = vld [vmem:[%s3817_s1 + $0x498] sm:$0xff]  }
  0x5e   :  { %2694 = vmatprep.subr.bf16.mxu1 %v2984_v42  ;;  %v3044_v42 = vld [vmem:[%s3817_s1 + $0x4e0] sm:$0xff]  }
  0x5f   :  { %2673 = vmatpush3.bf16.msra.mxu0 %v2983_v41  ;;  %v3043_v41 = vld [vmem:[%s3817_s1 + $0x420] sm:$0xff]  }
  0x60   :  { %2702 = vmatprep.subr.bf16.mxu0 %v2988_v47  ;;  %v3049_v47 = vld [vmem:[%s3817_s1 + $0x4a8] sm:$0xff]  }
  0x61   :  { %2695 = vmatpush3.bf16.msra.mxu1 %v2987_v46  ;;  %v3048_v46 = vld [vmem:[%s3817_s1 + $0x4e8] sm:$0xff]  }
  0x62   :  { %1893 = vmatmul.mubr.bf16.vlgmr.msra.gmra.mrb[8].mxu0 %v2347_v44  ;;  %2724 = vmatprep.subr.bf16.mxu1 %v2992_v52  ;;  %v3046_v44 = vld [vmem:[%s3817_s1 + $0x468] sm:$0xff]   ;;  %v3054_v52 = vld [vmem:[%s3817_s1 + $0x478] sm:$0xff]  }
  0x63   :  { %2703 = vmatpush3.bf16.msra.mxu0 %v2991_v51  ;;  %1972 = vmatprep.mubr.bf16.mxu0 %v2352_v19  ;;  %v3053_v51 = vld [vmem:[%s3817_s1 + $0x4b0] sm:$0xff]   ;;  %v3083_v19 = vld [vmem:[%s3817_s1 + $0x528] sm:$0xff]  }
  0x64   :  { %1933 = vmatmul.mubr.bf16.vlgmr.msra.gmra.mrb[8].mxu1 %v2349_v49  ;;  %2704 = vmatprep.subr.bf16.mxu0 %v2994_v54  ;;  %v3051_v49 = vld [vmem:[%s3817_s1 + $0x430] sm:$0xff]   ;;  %v3056_v54 = vld [vmem:[%s3817_s1 + $0x4f8] sm:$0xff]  }
  0x65   :  { %2725 = vmatpush3.bf16.msra.mxu1 %v2993_v53  ;;  %2012 = vmatprep.mubr.bf16.mxu1 %v2354_v24  ;;  %v3055_v53 = vld [vmem:[%s3817_s1 + $0x438] sm:$0xff]   ;;  %v3088_v24 = vld [vmem:[%s3817_s1 + $0x5f0] sm:$0xff]  }
  0x66   :  { %2726 = vmatprep.subr.bf16.mxu1 %v2996_v56 }
  0x67   :  { %2705 = vmatpush3.bf16.msra.mxu0 %v2995_v55  ;;  %v29_v55 = vld [vmem:[%s3818_s0 + $0x40] sm:$0xff] }
  0x68   :  { %2706 = vmatprep.subr.bf16.mxu0 %v2998_v58  ;;  %v2355_v56 = vcombine.low %v29_v55, %v29_v55  ;;  %v3059_v58 = vld [vmem:[%s3817_s1 + $0x4b8] sm:$0xff]  }
  0x69   :  { %2727 = vmatpush3.bf16.msra.mxu1 %v2997_v57  ;;  %v2356_v57 = vcombine.high %v29_v55, %v29_v55  ;;  %v3103_v55 = vld [vmem:[%s3820_s3] sm:$0xff]  }
  0x6a   :  { %2728 = vmatprep.subr.bf16.mxu1 %v3000_v60  ;;  %v30_v60 = vld [vmem:[%s3818_s0 + $0x48] sm:$0xff] }
  0x6b   :  { %2707 = vmatpush3.bf16.msra.mxu0 %v2999_v59  ;;  %v3060_v59 = vld [vmem:[%s3817_s1 + $0x540] sm:$0xff]  }
  0x6c   :  { %2708 = vmatprep.subr.bf16.mxu0 %v3002_v62  ;;  %v2358_v62 = vcombine.high %v30_v60, %v30_v60 }
  0x6d   :  { %2729 = vmatpush3.bf16.msra.mxu1 %v3001_v61  ;;  %v2357_v61 = vcombine.low %v30_v60, %v30_v60 }
  0x6e   :  { %2730 = vmatprep.subr.bf16.mxu1 %v3004_v0  ;;  %v3064_v0 = vld [vmem:[%s3817_s1 + $0x5c0] sm:$0xff]  }
  0x6f   :  { %2709 = vmatpush3.bf16.msra.mxu0 %v3003_v63  ;;  %v3063_v63 = vld [vmem:[%s3817_s1 + $0x500] sm:$0xff]  }
  0x70   :  { %2710 = vmatprep.subr.bf16.mxu0 %v3006_v2  ;;  %v3066_v2 = vld [vmem:[%s3817_s1 + $0x548] sm:$0xff]  }
  0x71   :  { %2731 = vmatpush3.bf16.msra.mxu1 %v3005_v1  ;;  %v3065_v1 = vld [vmem:[%s3817_s1 + $0x580] sm:$0xff]  }
  0x72   :  { %2732 = vmatprep.subr.bf16.mxu1 %v3008_v4  ;;  %v3068_v4 = vld [vmem:[%s3817_s1 + $0x5c8] sm:$0xff]  }
  0x73   :  { %2711 = vmatpush3.bf16.msra.mxu0 %v3007_v3  ;;  %v3067_v3 = vld [vmem:[%s3817_s1 + $0x508] sm:$0xff]  }
  0x74   :  { %2712 = vmatprep.subr.bf16.mxu0 %v3010_v6  ;;  %v3070_v6 = vld [vmem:[%s3817_s1 + $0x550] sm:$0xff]  }
  0x75   :  { %2733 = vmatpush3.bf16.msra.mxu1 %v3009_v5  ;;  %v3069_v5 = vld [vmem:[%s3817_s1 + $0x588] sm:$0xff]  }
  0x76   :  { %2734 = vmatprep.subr.bf16.mxu1 %v3012_v8  ;;  %v3072_v8 = vld [vmem:[%s3817_s1 + $0x5d0] sm:$0xff]  }
  0x77   :  { %2713 = vmatpush3.bf16.msra.mxu0 %v3011_v7  ;;  %v3071_v7 = vld [vmem:[%s3817_s1 + $0x510] sm:$0xff]  }
  0x78   :  { %2714 = vmatprep.subr.bf16.mxu0 %v3014_v10  ;;  %v3074_v10 = vld [vmem:[%s3817_s1 + $0x558] sm:$0xff]  }
  0x79   :  { %2735 = vmatpush3.bf16.msra.mxu1 %v3013_v9  ;;  %v3073_v9 = vld [vmem:[%s3817_s1 + $0x590] sm:$0xff]  }
  0x7a   :  { %2736 = vmatprep.subr.bf16.mxu1 %v3016_v12  ;;  %v3076_v12 = vld [vmem:[%s3817_s1 + $0x5d8] sm:$0xff]  }
  0x7b   :  { %2715 = vmatpush3.bf16.msra.mxu0 %v3015_v11  ;;  %v3075_v11 = vld [vmem:[%s3817_s1 + $0x518] sm:$0xff]  }
  0x7c   :  { %2716 = vmatprep.subr.bf16.mxu0 %v3018_v14  ;;  %v3078_v14 = vld [vmem:[%s3817_s1 + $0x560] sm:$0xff]  }
  0x7d   :  { %2737 = vmatpush3.bf16.msra.mxu1 %v3017_v13  ;;  %v3077_v13 = vld [vmem:[%s3817_s1 + $0x598] sm:$0xff]  }
  0x7e   :  { %2738 = vmatprep.subr.bf16.mxu1 %v3020_v16  ;;  %v3080_v16 = vld [vmem:[%s3817_s1 + $0x5e0] sm:$0xff]  }
  0x7f   :  { %2717 = vmatpush3.bf16.msra.mxu0 %v3019_v15  ;;  %v3079_v15 = vld [vmem:[%s3817_s1 + $0x520] sm:$0xff]  }
  0x80   :  { %2746 = vmatprep.subr.bf16.mxu0 %v3024_v21  ;;  %v3085_v21 = vld [vmem:[%s3817_s1 + $0x5a8] sm:$0xff]  }
  0x81   :  { %2739 = vmatpush3.bf16.msra.mxu1 %v3023_v20  ;;  %v3084_v20 = vld [vmem:[%s3817_s1 + $0x5e8] sm:$0xff]  }
  0x82   :  { %1973 = vmatmul.mubr.bf16.vlgmr.msra.gmra.mrb[12].mxu0 %v2351_v18  ;;  %2768 = vmatprep.subr.bf16.mxu1 %v3028_v26  ;;  %v3082_v18 = vld [vmem:[%s3817_s1 + $0x568] sm:$0xff]   ;;  %v3090_v26 = vld [vmem:[%s3817_s1 + $0x578] sm:$0xff]  }
  0x83   :  { %2747 = vmatpush3.bf16.msra.mxu0 %v3027_v25  ;;  %2052 = vmatprep.mubr.bf16.mxu0 %v2356_v57  ;;  %v3089_v25 = vld [vmem:[%s3817_s1 + $0x5b0] sm:$0xff]  }
  0x84   :  { %2013 = vmatmul.mubr.bf16.vlgmr.msra.gmra.mrb[12].mxu1 %v2353_v23  ;;  %2748 = vmatprep.subr.bf16.mxu0 %v3030_v28  ;;  %v3087_v23 = vld [vmem:[%s3817_s1 + $0x530] sm:$0xff]   ;;  %v3092_v28 = vld [vmem:[%s3817_s1 + $0x5f8] sm:$0xff]  }
  0x85   :  { %2769 = vmatpush3.bf16.msra.mxu1 %v3029_v27  ;;  %2092 = vmatprep.mubr.bf16.mxu1 %v2358_v62  ;;  %v3091_v27 = vld [vmem:[%s3817_s1 + $0x538] sm:$0xff]  }
  0x86   :  { %2770 = vmatprep.subr.bf16.mxu1 %v3032_v30 }
  0x87   :  { %2749 = vmatpush3.bf16.msra.mxu0 %v3031_v29  ;;  %v31_v29 = vld [vmem:[%s3818_s0 + $0x50] sm:$0xff] }
  0x88   :  { %2750 = vmatprep.subr.bf16.mxu0 %v3034_v32  ;;  %v2359_v30 = vcombine.low %v31_v29, %v31_v29  ;;  %v3095_v32 = vld [vmem:[%s3817_s1 + $0x5b8] sm:$0xff]  }
  0x89   :  { %2771 = vmatpush3.bf16.msra.mxu1 %v3033_v31  ;;  %v2360_v31 = vcombine.high %v31_v29, %v31_v29 }
  0x8a   :  { %2772 = vmatprep.subr.bf16.mxu1 %v3036_v34  ;;  %v3111_v34 = vmov 0.0  }
  0x8b   :  { %2751 = vmatpush3.bf16.msra.mxu0 %v3035_v33  ;;  %v32_v33 = vld [vmem:[%s3818_s0 + $0x58] sm:$0xff] }
  0x8c   :  { %2752 = vmatprep.subr.bf16.mxu0 %v3038_v36  ;;  %v2362_v36 = vcombine.high %v32_v33, %v32_v33 }
  0x8d   :  { %2773 = vmatpush3.bf16.msra.mxu1 %v3037_v35  ;;  %v2361_v35 = vcombine.low %v32_v33, %v32_v33 }
  0x8e   :  { %2774 = vmatprep.subr.bf16.mxu1 %v3040_v38  ;;  %v3099_v38 = vld [vmem:[%s3817_s1 + $0x608] sm:$0xff]  }
  0x8f   :  { %2753 = vmatpush3.bf16.msra.mxu0 %v3039_v37  ;;  %v3098_v37 = vld [vmem:[%s3817_s1 + $0x600] sm:$0xff]  }
  0x90   :  { %2754 = vmatprep.subr.bf16.mxu0 %v3042_v40  ;;  %v3101_v40 = vld [vmem:[%s3817_s1 + $0x618] sm:$0xff]  }
  0x91   :  { %2775 = vmatpush3.bf16.msra.mxu1 %v3041_v39  ;;  %v3100_v39 = vld [vmem:[%s3817_s1 + $0x610] sm:$0xff]  }
  0x92   :  { %2776 = vmatprep.subr.bf16.mxu1 %v3044_v42 }
  0x93   :  { %2755 = vmatpush3.bf16.msra.mxu0 %v3043_v41  ;;  %v3102_v41 = vld [vmem:[%s3818_s0 + $0x60] ss:$0 sps:$4 sm:$0xff]  }
  0x94   :  { %2756 = vmatprep.subr.bf16.mxu0 %v3046_v44 }
  0x95   :  { %2777 = vmatpush3.bf16.msra.mxu1 %v3045_v43  ;;  %v2338_v43 = vld [vmem:[%s3819_s2] ss:$0 sm:$0xff] }
  0x96   :  { %2778 = vmatprep.subr.bf16.mxu1 %v3048_v46 }
  0x97   :  { %2757 = vmatpush3.bf16.msra.mxu0 %v3047_v45 }
  0x98   :  { %2758 = vmatprep.subr.bf16.mxu0 %v3050_v48 }
  0x99   :  { %2779 = vmatpush3.bf16.msra.mxu1 %v3049_v47 }
  0x9a   :  { %2780 = vmatprep.subr.bf16.mxu1 %v3052_v50 }
  0x9b   :  { %2759 = vmatpush3.bf16.msra.mxu0 %v3051_v49 }
  0x9c   :  { %2760 = vmatprep.subr.bf16.mxu0 %v3054_v52 }
  0x9d   :  { %2781 = vmatpush3.bf16.msra.mxu1 %v3053_v51 }
  0x9e   :  { %2782 = vmatprep.subr.bf16.mxu1 %v3056_v54 }
  0x9f   :  { %2761 = vmatpush3.bf16.msra.mxu0 %v3055_v53 }
  0xa0   :  { %2790 = vmatprep.subr.bf16.mxu0 %v3060_v59  ;;  %v3105_v59 = vld [vmem:[%s3820_s3 + $0x10] sm:$0xff]  }
  0xa1   :  { %2783 = vmatpush3.bf16.msra.mxu1 %v3059_v58 }
  0xa2   :  { %2053 = vmatmul.mubr.bf16.vlgmr.msra.gmra.mrb[16].mxu0 %v2355_v56  ;;  %2812 = vmatprep.subr.bf16.mxu1 %v3064_v0  ;;  %v3104_v56 = vld [vmem:[%s3820_s3 + $0x8] sm:$0xff]  }
  0xa3   :  { %2791 = vmatpush3.bf16.msra.mxu0 %v3063_v63  ;;  %2132 = vmatprep.mubr.bf16.mxu0 %v2360_v31 }
  0xa4   :  { %2093 = vmatmul.mubr.bf16.vlgmr.msra.gmra.mrb[16].mxu1 %v2357_v61  ;;  %2792 = vmatprep.subr.bf16.mxu0 %v3066_v2 }
  0xa5   :  { %2813 = vmatpush3.bf16.msra.mxu1 %v3065_v1  ;;  %2172 = vmatprep.mubr.bf16.mxu1 %v2362_v36 }
  0xa6   :  { %2814 = vmatprep.subr.bf16.mxu1 %v3068_v4  ;;  %v3106_v4 = vld [vmem:[%s3820_s3 + $0x18] sm:$0xff]  }
  0xa7   :  { %2793 = vmatpush3.bf16.msra.mxu0 %v3067_v3 }
  0xa8   :  { %2794 = vmatprep.subr.bf16.mxu0 %v3070_v6 }
  0xa9   :  { %2815 = vmatpush3.bf16.msra.mxu1 %v3069_v5 }
  0xaa   :  { %2816 = vmatprep.subr.bf16.mxu1 %v3072_v8  ;;  %v3108_v8 = vld [vmem:[%s3820_s3 + $0x28] sm:$0xff]  }
  0xab   :  { %2795 = vmatpush3.bf16.msra.mxu0 %v3071_v7  ;;  %v3107_v7 = vld [vmem:[%s3820_s3 + $0x20] sm:$0xff]  }
  0xac   :  { %2796 = vmatprep.subr.bf16.mxu0 %v3074_v10  ;;  %v3110_v10 = vld [vmem:[%s3820_s3 + $0x38] sm:$0xff]  }
  0xad   :  { %2817 = vmatpush3.bf16.msra.mxu1 %v3073_v9  ;;  %v3109_v9 = vld [vmem:[%s3820_s3 + $0x30] sm:$0xff]  }
  0xae   :  { %2818 = vmatprep.subr.bf16.mxu1 %v3076_v12 }
  0xaf   :  { %2797 = vmatpush3.bf16.msra.mxu0 %v3075_v11 }
  0xb0   :  { %2798 = vmatprep.subr.bf16.mxu0 %v3078_v14 }
  0xb1   :  { %2819 = vmatpush3.bf16.msra.mxu1 %v3077_v13 }
  0xb2   :  { %2820 = vmatprep.subr.bf16.mxu1 %v3080_v16 }
  0xb3   :  { %2799 = vmatpush3.bf16.msra.mxu0 %v3079_v15 }
  0xb4   :  { %2800 = vmatprep.subr.bf16.mxu0 %v3082_v18 }
  0xb5   :  { %2821 = vmatpush3.bf16.msra.mxu1 %v3081_v17 }
  0xb6   :  { %2822 = vmatprep.subr.bf16.mxu1 %v3084_v20 }
  0xb7   :  { %2801 = vmatpush3.bf16.msra.mxu0 %v3083_v19 }
  0xb8   :  { %2802 = vmatprep.subr.bf16.mxu0 %v3086_v22 }
  0xb9   :  { %2823 = vmatpush3.bf16.msra.mxu1 %v3085_v21 }
  0xba   :  { %2824 = vmatprep.subr.bf16.mxu1 %v3088_v24 }
  0xbb   :  { %2803 = vmatpush3.bf16.msra.mxu0 %v3087_v23 }
  0xbc   :  { %2804 = vmatprep.subr.bf16.mxu0 %v3090_v26 }
  0xbd   :  { %2825 = vmatpush3.bf16.msra.mxu1 %v3089_v25 }
  0xbe   :  { %2826 = vmatprep.subr.bf16.mxu1 %v3092_v28 }
  0xbf   :  { %2805 = vmatpush3.bf16.msra.mxu0 %v3091_v27 }
  0xc0   :  { %2848 = vmatprep.subr.bf16.mxu0 %v3111_v34 }
  0xc1   :  { %2827 = vmatpush3.bf16.msra.mxu1 %v3095_v32 }
  0xc2   :  { %2133 = vmatmul.mubr.bf16.vlgmr.msra.gmra.mrb[20].mxu0 %v2359_v30  ;;  %2860 = vmatprep.subr.bf16.mxu1 %v3111_v34 }
  0xc3   :  { %2849 = vmatpush3.bf16.msra.mxu0 %v3098_v37  ;;  %2856 = vmatprep.mubr.msk.bf16.mxu0 %vm3112_vm0, %v3111_v34 }
  0xc4   :  { %2173 = vmatmul.mubr.bf16.vlgmr.msra.gmra.mrb[20].mxu1 %v2361_v35  ;;  %2850 = vmatprep.subr.bf16.mxu0 %v3111_v34 }
  0xc5   :  { %2876 = vmatprep.mubr.msk.bf16.mxu1 %vm3112_vm0, %v3111_v34  ;;  %2861 = vmatpush3.bf16.msra.mxu1 %v3103_v55 }
  0xc6   :  { %2862 = vmatprep.subr.bf16.mxu1 %v3111_v34 }
  0xc7   :  { %2851 = vmatpush3.bf16.msra.mxu0 %v3099_v38 }
  0xc8   :  { %2852 = vmatprep.subr.bf16.mxu0 %v3111_v34 }
  0xc9   :  { %2863 = vmatpush3.bf16.msra.mxu1 %v3104_v56 }
  0xca   :  { %2864 = vmatprep.subr.bf16.mxu1 %v3111_v34 }
  0xcb   :  { %2853 = vmatpush3.bf16.msra.mxu0 %v3100_v39 }
  0xcc   :  { %2854 = vmatprep.subr.bf16.mxu0 %v3111_v34 }
  0xcd   :  { %2865 = vmatpush3.bf16.msra.mxu1 %v3105_v59 }
  0xce   :  { %2866 = vmatprep.subr.bf16.mxu1 %v3111_v34 }
  0xcf   :  { %2855 = vmatpush3.bf16.msra.mxu0 %v3101_v40 }
  0xd1   :  { %2867 = vmatpush3.bf16.msra.mxu1 %v3106_v4 }
  0xd2   :  { %2857 = vmatmul.mubr.msk.bf16.vlgmr.msra.gmra.mrb[24].mxu0 %vm1696_vm1, %v3102_v41  ;;  %2868 = vmatprep.subr.bf16.mxu1 %v3111_v34 }
  0xd5   :  { %2869 = vmatpush3.bf16.msra.mxu1 %v3107_v7 }
  0xd6   :  { %2870 = vmatprep.subr.bf16.mxu1 %v3111_v34 }
  0xd9   :  { %2871 = vmatpush3.bf16.msra.mxu1 %v3108_v8 }
  0xda   :  { %2872 = vmatprep.subr.bf16.mxu1 %v3111_v34 }
  0xdd   :  { %2873 = vmatpush3.bf16.msra.mxu1 %v3109_v9 }
  0xde   :  { %2874 = vmatprep.subr.bf16.mxu1 %v3111_v34 }
  0xe1   :  { %2875 = vmatpush3.bf16.msra.mxu1 %v3110_v10 }
  0xf5   :  { %v2586_v42 = vpop.f32.mrb[0].mxu0 }
  0xf6   :  { %v2587_v44 = vpop.f32.mrb[1].mxu0 }
  0xf7   :  { %v2588_v45 = vadd.f32 %v2587_v44, %v2586_v42  ;;  %v2589_v46 = vpop.f32.mrb[2].mxu0  ;;  %v2608_v47 = vpop.f32.mrb[0].mxu1 }
  0xf8   :  { %v2590_v48 = vpop.f32.mrb[3].mxu0  ;;  %v2609_v49 = vpop.f32.mrb[1].mxu1 }
  0xf9   :  { %v1735_v50 = vadd.f32 %v2588_v45, %v2338_v43  ;;  %v2610_v51 = vadd.f32 %v2609_v49, %v2608_v47  ;;  %v2611_v52 = vpop.f32.mrb[2].mxu1 }
  0xfa   :  { %v2612_v53 = vpop.f32.mrb[3].mxu1 }
  0xfb   :  { %v1775_v54 = vadd.f32 %v2610_v51, %v1735_v50 }
 0x115   :  { %v2630_v57 = vpop.f32.mrb[4].mxu0 }
 0x116   :  { %v2631_v58 = vpop.f32.mrb[5].mxu0 }
 0x117   :  { %v2632_v60 = vadd.f32 %v2631_v58, %v2630_v57  ;;  %v2633_v61 = vpop.f32.mrb[6].mxu0  ;;  %v2652_v62 = vpop.f32.mrb[4].mxu1 }
 0x118   :  { %v2634_v63 = vpop.f32.mrb[7].mxu0  ;;  %v2653_v1 = vpop.f32.mrb[5].mxu1 }
 0x119   :  { %v1815_v0 = vadd.f32 %v2632_v60, %v1775_v54  ;;  %v2654_v2 = vadd.f32 %v2653_v1, %v2652_v62  ;;  %v2655_v3 = vpop.f32.mrb[6].mxu1 }
 0x11a   :  { %v2656_v5 = vpop.f32.mrb[7].mxu1 }
 0x11b   :  { %v1855_v6 = vadd.f32 %v2654_v2, %v1815_v0  ;;  %v2561_v2 = vld [vmem:[%s3821_s4] ss:$0 sm:$0xff] }
 0x135   :  { %v2674_v11 = vpop.f32.mrb[8].mxu0 }
 0x136   :  { %v2675_v12 = vpop.f32.mrb[9].mxu0 }
 0x137   :  { %v2676_v13 = vadd.f32 %v2675_v12, %v2674_v11  ;;  %v2677_v14 = vpop.f32.mrb[10].mxu0  ;;  %v2696_v15 = vpop.f32.mrb[8].mxu1 }
 0x138   :  { %v2678_v16 = vpop.f32.mrb[11].mxu0  ;;  %v2697_v17 = vpop.f32.mrb[9].mxu1 }
 0x139   :  { %v1895_v18 = vadd.f32 %v2676_v13, %v1855_v6  ;;  %v2698_v19 = vadd.f32 %v2697_v17, %v2696_v15  ;;  %v2699_v20 = vpop.f32.mrb[10].mxu1 }
 0x13a   :  { %v2700_v21 = vpop.f32.mrb[11].mxu1 }
 0x13b   :  { %v1935_v22 = vadd.f32 %v2698_v19, %v1895_v18 }
 0x155   :  { %v2718_v23 = vpop.f32.mrb[12].mxu0 }
 0x156   :  { %v2719_v24 = vpop.f32.mrb[13].mxu0 }
 0x157   :  { %v2720_v25 = vadd.f32 %v2719_v24, %v2718_v23  ;;  %v2721_v26 = vpop.f32.mrb[14].mxu0  ;;  %v2740_v27 = vpop.f32.mrb[12].mxu1 }
 0x158   :  { %v2722_v28 = vpop.f32.mrb[15].mxu0  ;;  %v2741_v29 = vpop.f32.mrb[13].mxu1 }
 0x159   :  { %v1975_v30 = vadd.f32 %v2720_v25, %v1935_v22  ;;  %v2742_v31 = vadd.f32 %v2741_v29, %v2740_v27  ;;  %v2743_v32 = vpop.f32.mrb[14].mxu1 }
 0x15a   :  { %v2744_v33 = vpop.f32.mrb[15].mxu1 }
 0x15b   :  { %v2015_v34 = vadd.f32 %v2742_v31, %v1975_v30 }
 0x175   :  { %v2762_v35 = vpop.f32.mrb[16].mxu0 }
 0x176   :  { %v2763_v36 = vpop.f32.mrb[17].mxu0 }
 0x177   :  { %v2764_v37 = vadd.f32 %v2763_v36, %v2762_v35  ;;  %v2765_v38 = vpop.f32.mrb[18].mxu0  ;;  %v2784_v39 = vpop.f32.mrb[16].mxu1 }
 0x178   :  { %v2766_v40 = vpop.f32.mrb[19].mxu0  ;;  %v2785_v42 = vpop.f32.mrb[17].mxu1 }
 0x179   :  { %v2055_v41 = vadd.f32 %v2764_v37, %v2015_v34  ;;  %v2786_v43 = vadd.f32 %v2785_v42, %v2784_v39  ;;  %v2787_v44 = vpop.f32.mrb[18].mxu1 }
 0x17a   :  { %v2788_v45 = vpop.f32.mrb[19].mxu1 }
 0x17b   :  { %v2095_v46 = vadd.f32 %v2786_v43, %v2055_v41 }
 0x195   :  { %v2806_v47 = vpop.f32.mrb[20].mxu0 }
 0x196   :  { %v2807_v48 = vpop.f32.mrb[21].mxu0 }
 0x197   :  { %v2808_v49 = vadd.f32 %v2807_v48, %v2806_v47  ;;  %v2809_v50 = vpop.f32.mrb[22].mxu0  ;;  %v2828_v51 = vpop.f32.mrb[20].mxu1 }
 0x198   :  { %v2810_v52 = vpop.f32.mrb[23].mxu0  ;;  %v2829_v53 = vpop.f32.mrb[21].mxu1 }
 0x199   :  { %v2135_v54 = vadd.f32 %v2808_v49, %v2095_v46  ;;  %v2830_v55 = vadd.f32 %v2829_v53, %v2828_v51  ;;  %v2831_v56 = vpop.f32.mrb[22].mxu1 }
 0x19a   :  { %v2832_v57 = vpop.f32.mrb[23].mxu1 }
 0x19b   :  { %v2175_v58 = vadd.f32 %v2830_v55, %v2135_v54 }
 0x1a5   :  { %v2214_v59 = vpop.f32.mrb[24].mxu0 }
 0x1a6   :  { %v2215_v60 = vadd.f32 %v2214_v59, %v2175_v58  ;;  %v2858_v61 = vpop.f32.mrb[25].mxu0 }
 0x1a7   :  { %v2217_v62 = vpop.f32.mrb[26].mxu0 }
 0x1a8   :  { %v2220_v63 = vmax.f32 %v2215_v60, 0.0  ;;  %v2859_v0 = vpop.f32.mrb[27].mxu0 }
 0x1aa   :  { %v2221_v1 = vpack.c.bf16 %v2220_v63, %v2220_v63 }
 0x1ac   :  { %2877 = vmatmul.mubr.bf16.vlgmr.msra.gmra.mrb[24].mxu1 %v2221_v1 }
 0x27f   :  { %v2327_v3 = vpop.f32.mrb[24].mxu1 }
 0x280   :  { %v2328_v4 = vadd.f32 %v2561_v2, %v2327_v3  ;;  %v2878_v5 = vpop.f32.mrb[25].mxu1 }
 0x281   :  { %v2330_v6 = vpop.f32.mrb[26].mxu1 }
 0x282   :  { %2333 = vst [vmem:[%s3822_s5] sm:$0xff] %v2328_v4  ;;  %v2879_v7 = vpop.f32.mrb[27].mxu1 }

</bundles_post_ra>
